<compile_context>
chip_gen: v7x
topology: tpu7x:2x2x1
jax: 0.10.0
libtpu: 0.0.40
codegen_flags: <defaults>
</compile_context>

<pallas_src>
import functools

import jax
import jax.numpy as jnp
from jax.experimental import pallas as pl
from jax.experimental.pallas import tpu as pltpu


def _round_up(n, mult):
    return ((n + mult - 1) // mult) * mult


def _ffn_kernel(x_ref, w13_ref, w2_ref, o_ref, *, hidden):
    # x_ref:   (tm, dim)        token tile (compute dtype, e.g. bf16)
    # w13_ref: (dim, 2*hidden)  fused [w1^T | w3^T], resident across the grid
    # w2_ref:  (hidden, dim)    resident
    # o_ref:   (tm, dim)        original input dtype
    x = x_ref[...]
    # One MXU pass produces both up-projections; f32 accumulation.
    h = jnp.dot(x, w13_ref[...], preferred_element_type=jnp.float32)
    h1 = h[:, :hidden]            # static, lane-aligned slices (hidden % 128 == 0)
    h3 = h[:, hidden:]
    # SiLU gate in f32 (sigmoid goes to the EUP slot).
    gated = (h1 * jax.nn.sigmoid(h1)) * h3
    out = jnp.dot(gated.astype(w2_ref.dtype), w2_ref[...],
                  preferred_element_type=jnp.float32)
    o_ref[...] = out.astype(o_ref.dtype)


@functools.partial(jax.jit, static_argnames=("tm", "compute_dtype"))
def ffn_pallas(x, w1_t, w3_t, w2_t, *, tm=None, compute_dtype=jnp.bfloat16):
    """x: (batch, seq, dim). Weights pre-transposed to (in, out) layout."""
    orig_dtype = x.dtype
    b, s, dim = x.shape
    hidden = w1_t.shape[1]
    m = b * s

    # Fuse the two up-projections and cast weights/activations to the compute
    # dtype.  (In a real model, pre-fuse/pre-cast the weights once outside the
    # step function rather than per call.)
    w13 = jnp.concatenate([w1_t, w3_t], axis=1).astype(compute_dtype)
    w2c = w2_t.astype(compute_dtype)
    x2d = x.reshape(m, dim).astype(compute_dtype)

    # Token-tile selection:
    #  - large m: 256-row tiles keep the 256-wide MXUs of v6e/v7x fed while
    #    staying well under the VMEM budget (sweep 256/512 per generation).
    #  - small m: split into >=2 "parallel" tiles so both v7x TensorCores work.
    if tm is None:
        if m >= 512:
            tm = 256
        else:
            tm = max(8, _round_up(pl.cdiv(m, 2), 8))
    assert tm % 8 == 0, "row tile must be sublane-aligned (multiple of 8)"

    # Pad the token count up to the tile instead of asserting divisibility.
    m_pad = _round_up(m, tm)
    if m_pad != m:
        x2d = jnp.pad(x2d, ((0, m_pad - m), (0, 0)))

    grid = (m_pad // tm,)

    elt = jnp.dtype(compute_dtype).itemsize
    cost = pl.CostEstimate(
        flops=6 * m_pad * dim * hidden,          # 2*m*d*(2h) + 2*m*h*d
        transcendentals=m_pad * hidden,          # sigmoid
        bytes_accessed=(w13.size + w2c.size + m_pad * dim) * elt
        + m_pad * dim * jnp.dtype(orig_dtype).itemsize,
    )

    out2d = pl.pallas_call(
        functools.partial(_ffn_kernel, hidden=hidden),
        out_shape=jax.ShapeDtypeStruct((m_pad, dim), orig_dtype),
        grid=grid,
        in_specs=[
            pl.BlockSpec((tm, dim), lambda i: (i, 0)),           # x tile (pipelined)
            pl.BlockSpec((dim, 2 * hidden), lambda i: (0, 0)),   # fused w13 (resident)
            pl.BlockSpec((hidden, dim), lambda i: (0, 0)),       # w2 (resident)
        ],
        out_specs=pl.BlockSpec((tm, dim), lambda i: (i, 0)),
        cost_estimate=cost,
        compiler_params=pltpu.CompilerParams(
            dimension_semantics=("parallel",),
            # Explicit VMEM budget: ~8 MiB needed at tm=256 in bf16 (resident
            # bf16 weights ~2.3 MiB + tiles + scratch); 32 MiB is safe on all
            # gens (v7x physical = 64 MiB, v5e/v6e physical = 128 MiB).
            vmem_limit_bytes=32 * 1024 * 1024,
        ),
    )(x2d, w13, w2c)
    # TODO(synk): at real-model dims where w13/w2 no longer fit in VMEM (v7x
    # hits this first), tile the hidden axis as an "arbitrary" grid dim with a
    # pl.when-initialized accumulator instead of keeping weights fully resident.

    if m_pad != m:
        out2d = out2d[:m]
    return out2d.reshape(b, s, dim)


def ffn_reference_f32(x, w1_t, w3_t, w2_t):
    """Pure f32 reference (matches the torch module's math)."""
    h1 = x @ w1_t
    h3 = x @ w3_t
    return (jax.nn.silu(h1) * h3) @ w2_t


def ffn_reference_bf16(x, w1_t, w3_t, w2_t, compute_dtype=jnp.bfloat16):
    """Reference that mirrors the kernel's bf16-in / f32-accumulate math."""
    f32 = jnp.float32
    xc = x.astype(compute_dtype).astype(f32)
    w1c = w1_t.astype(compute_dtype).astype(f32)
    w3c = w3_t.astype(compute_dtype).astype(f32)
    w2c = w2_t.astype(compute_dtype).astype(f32)
    h1 = xc @ w1c
    h3 = xc @ w3c
    gated = (jax.nn.silu(h1) * h3).astype(compute_dtype).astype(f32)
    return (gated @ w2c).astype(x.dtype)


if __name__ == "__main__":
    # Config (ChameleonConfig defaults): dim=768 -> hidden_dim=512
    dim = 768
    hidden_dim = int(2 * dim / 3)
    hidden_dim = 256 * ((hidden_dim + 256 - 1) // 256)  # -> 512

    batch, seq = 2, 8

    key = jax.random.PRNGKey(0)
    kx, k1, k2, k3 = jax.random.split(key, 4)

    x = jax.random.normal(kx, (batch, seq, dim), dtype=jnp.float32)

    # Deterministic param init (synthetic; roughly Kaiming-uniform scale).
    def init_linear(k, fan_in, fan_out):
        bound = 1.0 / (fan_in ** 0.5)
        # stored as (in, out) == torch weight (out, in) transposed
        return jax.random.uniform(k, (fan_in, fan_out), jnp.float32,
                                  minval=-bound, maxval=bound)

    w1_t = init_linear(k1, dim, hidden_dim)     # w1: dim -> hidden
    w3_t = init_linear(k3, dim, hidden_dim)     # w3: dim -> hidden
    w2_t = init_linear(k2, hidden_dim, dim)     # w2: hidden -> dim

    out = ffn_pallas(x, w1_t, w3_t, w2_t)
    jax.block_until_ready(out)

    assert out.shape == (batch, seq, dim)
    assert out.dtype == x.dtype

    # Tight check vs. a reference using the same bf16-in / f32-accumulate math.
    ref_bf16 = ffn_reference_bf16(x, w1_t, w3_t, w2_t)
    assert jnp.allclose(out, ref_bf16, atol=1e-2, rtol=1e-2), \
        "mismatch vs bf16-path reference"

    # Loose check vs. the full-precision (torch-semantics) reference.
    ref_f32 = ffn_reference_f32(x, w1_t, w3_t, w2_t)
    assert jnp.allclose(out, ref_f32, atol=3e-2, rtol=5e-2), \
        "mismatch vs f32 reference"

    print("KERNEL_OK")
</pallas_src>

<mosaic_0001>
module attributes {stable_mosaic.version = 11 : i64} {
  func.func @_ffn_kernel(%arg0: i32, %arg1: memref<8x768xbf16, #tpu.memory_space<vmem>>, %arg2: memref<768x1024xbf16, #tpu.memory_space<vmem>>, %arg3: memref<512x768xbf16, #tpu.memory_space<vmem>>, %arg4: memref<8x768xf32, #tpu.memory_space<vmem>>) attributes {dimension_semantics = [#tpu.dimension_semantics<parallel>], iteration_bounds = array<i64: 2>, scalar_prefetch = 0 : i64, scratch_operands = 0 : i64, tpu.core_type = #tpu.core_type<tc>, window_params = [{transform_indices = @transform_0, window_bounds = array<i64: 8, 768>}, {pipeline_mode = #tpu.pipeline_mode<synchronous>, transform_indices = @transform_1, window_bounds = array<i64: 768, 1024>}, {pipeline_mode = #tpu.pipeline_mode<synchronous>, transform_indices = @transform_2, window_bounds = array<i64: 512, 768>}, {transform_indices = @transform_3, window_bounds = array<i64: 8, 768>}]} {
    %c0 = arith.constant 0 : index
    %c0_0 = arith.constant 0 : index
    %0 = vector.load %arg1[%c0, %c0_0] : memref<8x768xbf16, #tpu.memory_space<vmem>>, vector<8x768xbf16>
    %c0_1 = arith.constant 0 : index
    %c0_2 = arith.constant 0 : index
    %1 = vector.load %arg2[%c0_1, %c0_2] : memref<768x1024xbf16, #tpu.memory_space<vmem>>, vector<768x1024xbf16>
    %cst = arith.constant dense<0.000000e+00> : vector<8x1024xf32>
    %2 = tpu.matmul %0, %1, %cst {dimension_numbers = #tpu.dot_dimension_numbers<[1], [0], [0], [1], [0, 0, 1, 1], [], []>} : vector<8x768xbf16>, vector<768x1024xbf16>, vector<8x1024xf32> -> vector<8x1024xf32>
    %3 = vector.extract_strided_slice %2 {offsets = [0, 0], sizes = [8, 512], strides = [1, 1]} : vector<8x1024xf32> to vector<8x512xf32>
    %4 = vector.extract_strided_slice %2 {offsets = [0, 512], sizes = [8, 512], strides = [1, 1]} : vector<8x1024xf32> to vector<8x512xf32>
    %5 = arith.negf %3 : vector<8x512xf32>
    %6 = math.exp %5 : vector<8x512xf32>
    %cst_3 = arith.constant 1.000000e+00 : f32
    %7 = vector.broadcast %cst_3 : f32 to vector<8x512xf32>
    %8 = arith.addf %7, %6 : vector<8x512xf32>
    %9 = arith.divf %7, %8 : vector<8x512xf32>
    %10 = arith.mulf %3, %9 : vector<8x512xf32>
    %11 = arith.mulf %10, %4 : vector<8x512xf32>
    %12 = arith.truncf %11 : vector<8x512xf32> to vector<8x512xbf16>
    %c0_4 = arith.constant 0 : index
    %c0_5 = arith.constant 0 : index
    %13 = vector.load %arg3[%c0_4, %c0_5] : memref<512x768xbf16, #tpu.memory_space<vmem>>, vector<512x768xbf16>
    %cst_6 = arith.constant dense<0.000000e+00> : vector<8x768xf32>
    %14 = tpu.matmul %12, %13, %cst_6 {dimension_numbers = #tpu.dot_dimension_numbers<[1], [0], [0], [1], [0, 0, 1, 1], [], []>} : vector<8x512xbf16>, vector<512x768xbf16>, vector<8x768xf32> -> vector<8x768xf32>
    %c0_7 = arith.constant 0 : index
    %c0_8 = arith.constant 0 : index
    %15 = vector.load %arg4[%c0_7, %c0_8] : memref<8x768xf32, #tpu.memory_space<vmem>>, vector<8x768xf32>
    tpu.vector_store %arg4[%c0_7, %c0_8], %14 {strides = array<i32>} : memref<8x768xf32, #tpu.memory_space<vmem>>, vector<8x768xf32>,
    return
  }
  func.func @transform_0(%arg0: i32) -> (i32, i32) {
    %c0_i32 = arith.constant 0 : i32
    %c0_i32_0 = arith.constant 0 : i32
    return %arg0, %c0_i32 : i32, i32
  }
  func.func @transform_1(%arg0: i32) -> (i32, i32) {
    %c0_i32 = arith.constant 0 : i32
    %c0_i32_0 = arith.constant 0 : i32
    %c0_i32_1 = arith.constant 0 : i32
    return %c0_i32, %c0_i32_0 : i32, i32
  }
  func.func @transform_2(%arg0: i32) -> (i32, i32) {
    %c0_i32 = arith.constant 0 : i32
    %c0_i32_0 = arith.constant 0 : i32
    %c0_i32_1 = arith.constant 0 : i32
    return %c0_i32, %c0_i32_0 : i32, i32
  }
  func.func @transform_3(%arg0: i32) -> (i32, i32) {
    %c0_i32 = arith.constant 0 : i32
    %c0_i32_0 = arith.constant 0 : i32
    return %arg0, %c0_i32 : i32, i32
  }
}

</mosaic_0001>

<bundles_post_ra>
// kernel: ffn_pallas.1
= control target key start
LH: loop header
LB: loop body
LE: loop exit
PB: predicated region body
PF: predicated region fallthrough
CT: control target
= control target key end

     0   :  { %8 = vsyncpa [#allocation3], 0  ;;  %s7505_s0 = inlined_call_operand.vmem [shape: bf16[16,768], index: 0, kind: input, shape index: {}]   ;;  %s7506_s1 = inlined_call_operand.vmem [shape: bf16[768,1024], index: 1, kind: input, shape index: {}]   ;;  %s7507_s2 = inlined_call_operand.vmem [shape: bf16[512,768], index: 2, kind: input, shape index: {}]   ;;  %s7508_s3 = inlined_call_operand.hbm [shape: f32[16,768], index: 3, kind: output, shape index: {}]  }
   0x1   :  { %10 = vsyncpa [#allocation3 + $0x1], 0  ;;  %s5576_s12 = smov 0   ;;  %s5578_s13 = smov 0  }
   0x2   :  { %s5580_s14 = smov 0   ;;  %s5582_s15 = smov 0  }
   0x3 LB: > { %s5597_s16 = sadd.s32 4294967295, %s5553_s15   ;;  %s4503_s17 = sadd.s32 4294967294, %s5553_s15   ;;  %s5553_s15 = sphi %s5582_s15, %s7514_s15   ;;  %s5549_s14 = sphi %s5580_s14, %s7513_s14   ;;  %s5545_s13 = sphi %s5578_s13, %s7512_s13   ;;  %s5541_s12 = sphi %s5576_s12, %s7511_s12  }
   0x4   : > { %s5601_s18 = sadd.s32 1, %s5553_s15   ;;  %s91_s19 = sadd.s32 1, %s5549_s14 }
   0x5   : > { %s88_s20 = ssub.s32 %s5553_s15, %s5601_s18  ;;  %p101_p0 = scmp.ne.s32.totalorder %s5549_s14, %s5545_s13 }
   0x6   : > { %p89_p1 = scmp.eq.s32.totalorder %s88_s20, 0  ;;  %p102_p2 = scmp.eq.s32.totalorder %s5597_s16, 1 }
   0x7   : > { %p107_p3 = scmp.ne.s32.totalorder %s5545_s13, %s5541_s12  ;;  %p108_p4 = scmp.eq.s32.totalorder %s4503_s17, 1 }
   0x8   : > { %s5612_s21 = scalar_select %p89_p1, %s5549_s14, %s91_s19  }
   0x9   : > { %p5614_p5 = por %p102_p2, %p101_p0  ;;  %p5618_p6 = por %p108_p4, %p107_p3 }
   0xa   : > { %p4506_p7 = scmp.ge.s32.totalorder %s5553_s15, 1  ;;  %p140_p8 = scmp.lt.s32.totalorder %s5553_s15, 3 }
   0xc   : > { %p141_p9 = pnand %p4506_p7, %p140_p8 }
   0xd   : > { %v172_v0 = vld [vmem:[%s7506_s1] sm:$0xff] (!%p141_p9)  ;;  %p164_p10 = scmp.lt.s32.totalorder (!%p141_p9), %s5597_s16, 1  ;;  %s161_s7 = sand.u32 (!%p141_p9), 1, %s5545_s13  }
   0xe   : > { %144 = sbr.rel (%p141_p9) target bundleno = 1040 (0x410), region = 32  ;;  %v176_v1 = vld [vmem:[%s7506_s1 + $0x20] sm:$0xff] (!%p141_p9)  ;;  %s4430_s20 = scalar_lea.sflag (!%p141_p9), [#allocation3], %s161_s7 }
   0xf   : > { %v300_v2 = vld [vmem:[%s7506_s1 + $0x400] sm:$0xff] (!%p141_p9)  ;;  %v4515_v3 = vcombine.high (!%p141_p9), %v172_v0, %v176_v1  ;;  %v4514_v5 = vcombine.low (!%p141_p9), %v172_v0, %v176_v1  ;;  %s5139_s8 = smul.u32 (!%p141_p9), 48, %s161_s7 }
  0x10   : > { %v304_v4 = vld [vmem:[%s7506_s1 + $0x420] sm:$0xff] (!%p141_p9)  ;;  %s5141_s10 = smul.u32 (!%p141_p9), 768, %s5597_s16 }
  0x11   : > { %v180_v6 = vld [vmem:[%s7506_s1 + $0x40] sm:$0xff] (!%p141_p9)  ;;  %v4643_v8 = vcombine.high (!%p141_p9), %v300_v2, %v304_v4  ;;  %v4642_v9 = vcombine.low (!%p141_p9), %v300_v2, %v304_v4  ;;  %2497 = vmatprep.subr.bf16.mxu1 (!%p141_p9), %v4515_v3  ;;  %s163_s9 = scalar_lea.vmem (!%p141_p9), [#allocation2], %s5139_s8 }
  0x12   : > { %v184_v7 = vld [vmem:[%s7506_s1 + $0x60] sm:$0xff] (!%p141_p9)  ;;  %2498 = vmatpush1.bf16.msra.mxu1 (!%p141_p9), %v4514_v5  ;;  %s7463_s19 = scalar_lea.hbm (!%p141_p9), %s7508_s3, %s5141_s10 }
  0x13   : > { %v4523_v10 = vcombine.high (!%p141_p9), %v180_v6, %v184_v7  ;;  %v308_v11 = vld [vmem:[%s7506_s1 + $0x440] sm:$0xff] (!%p141_p9)  ;;  %2538 = vmatprep.subr.bf16.mxu0 (!%p141_p9), %v4643_v8  ;;  %v4522_v18 = vcombine.low (!%p141_p9), %v180_v6, %v184_v7 }
  0x14   : > { %v312_v12 = vld [vmem:[%s7506_s1 + $0x460] sm:$0xff] (!%p141_p9)  ;;  %2539 = vmatpush1.bf16.msra.mxu0 (!%p141_p9), %v4642_v9 }
  0x15   : > { %v188_v13 = vld [vmem:[%s7506_s1 + $0x80] sm:$0xff]  ;;  %v4651_v14 = vcombine.high %v308_v11, %v312_v12  ;;  %2499 = vmatprep.subr.bf16.mxu1 %v4523_v10  ;;  %v4650_v19 = vcombine.low %v308_v11, %v312_v12  ;;  %s165_s24 = scalar_select %p164_p10, %s5597_s16, 1 }
  0x16   : > { %v192_v15 = vld [vmem:[%s7506_s1 + $0xa0] sm:$0xff]  ;;  %2500 = vmatpush1.bf16.msra.mxu1 %v4522_v18  ;;  %s5555_s16 = smov [#allocation2]  }
  0x17   : > { %v316_v16 = vld [vmem:[%s7506_s1 + $0x480] sm:$0xff]  ;;  %v4531_v20 = vcombine.high %v188_v13, %v192_v15  ;;  %2540 = vmatprep.subr.bf16.mxu0 %v4651_v14  ;;  %v4530_v26 = vcombine.low %v188_v13, %v192_v15  ;;  %s5140_s6 = smul.u32 24, %s165_s24  ;;  %s5495_s25 = sshll.u32 %s5555_s16, 4  ;;  %s5496_s25 = int_to_ptr.vmem [resolvable:$false] %s5495_s25 }
  0x18   : > { %v320_v17 = vld [vmem:[%s7506_s1 + $0x4a0] sm:$0xff]  ;;  %2541 = vmatpush1.bf16.msra.mxu0 %v4650_v19  ;;  %s5497_s27 = scalar_lea.vmem %s5496_s25, 1536 }
  0x19   : > { %v4659_v21 = vcombine.high %v316_v16, %v320_v17  ;;  %v196_v22 = vld [vmem:[%s7506_s1 + $0xc0] sm:$0xff]  ;;  %2501 = vmatprep.subr.bf16.mxu1 %v4531_v20  ;;  %v4658_v27 = vcombine.low %v316_v16, %v320_v17  ;;  %s5707_s26 = scalar_lea.vmem %s7505_s0, %s5140_s6 }
  0x1a   : > { %v200_v23 = vld [vmem:[%s7506_s1 + $0xe0] sm:$0xff]  ;;  %2502 = vmatpush1.bf16.msra.mxu1 %v4530_v26  ;;  %v5719_v54 = vld [vmem:[%s5707_s26 + $0x8] sm:$0xff] }
  0x1b   : > { %v324_v24 = vld [vmem:[%s7506_s1 + $0x4c0] sm:$0xff]  ;;  %v4539_v28 = vcombine.high %v196_v22, %v200_v23  ;;  %2542 = vmatprep.subr.bf16.mxu0 %v4659_v21  ;;  %v4538_v34 = vcombine.low %v196_v22, %v200_v23  ;;  %v5739_v61 = vcombine.high %v5719_v54, %v5719_v54 }
  0x1c   : > { %v328_v25 = vld [vmem:[%s7506_s1 + $0x4e0] sm:$0xff]  ;;  %2543 = vmatpush1.bf16.msra.mxu0 %v4658_v27 }
  0x1d   : > { %v4667_v29 = vcombine.high %v324_v24, %v328_v25  ;;  %v204_v30 = vld [vmem:[%s7506_s1 + $0x100] sm:$0xff]  ;;  %2503 = vmatprep.subr.bf16.mxu1 %v4539_v28  ;;  %v4666_v35 = vcombine.low %v324_v24, %v328_v25  ;;  %2570 = vmatprep.mubr.bf16.mxu0 %v5739_v61 }
  0x1e   : > { %v208_v31 = vld [vmem:[%s7506_s1 + $0x120] sm:$0xff]  ;;  %2504 = vmatpush1.bf16.msra.mxu1 %v4538_v34 }
  0x1f   : > { %v332_v32 = vld [vmem:[%s7506_s1 + $0x500] sm:$0xff]  ;;  %v4547_v36 = vcombine.high %v204_v30, %v208_v31  ;;  %2544 = vmatprep.subr.bf16.mxu0 %v4667_v29  ;;  %v4546_v42 = vcombine.low %v204_v30, %v208_v31 }
  0x20   : > { %v336_v33 = vld [vmem:[%s7506_s1 + $0x520] sm:$0xff]  ;;  %2545 = vmatpush1.bf16.msra.mxu0 %v4666_v35 }
  0x21   : > { %v4675_v37 = vcombine.high %v332_v32, %v336_v33  ;;  %v212_v38 = vld [vmem:[%s7506_s1 + $0x140] sm:$0xff]  ;;  %2505 = vmatprep.subr.bf16.mxu1 %v4547_v36  ;;  %v4674_v43 = vcombine.low %v332_v32, %v336_v33 }
  0x22   : > { %v216_v39 = vld [vmem:[%s7506_s1 + $0x160] sm:$0xff]  ;;  %2506 = vmatpush1.bf16.msra.mxu1 %v4546_v42 }
  0x23   : > { %v340_v40 = vld [vmem:[%s7506_s1 + $0x540] sm:$0xff]  ;;  %v4555_v44 = vcombine.high %v212_v38, %v216_v39  ;;  %2546 = vmatprep.subr.bf16.mxu0 %v4675_v37  ;;  %v4554_v50 = vcombine.low %v212_v38, %v216_v39 }
  0x24   : > { %v344_v41 = vld [vmem:[%s7506_s1 + $0x560] sm:$0xff]  ;;  %2547 = vmatpush1.bf16.msra.mxu0 %v4674_v43 }
  0x25   : > { %v4683_v45 = vcombine.high %v340_v40, %v344_v41  ;;  %v220_v46 = vld [vmem:[%s7506_s1 + $0x180] sm:$0xff]  ;;  %2507 = vmatprep.subr.bf16.mxu1 %v4555_v44  ;;  %v4682_v51 = vcombine.low %v340_v40, %v344_v41 }
  0x26   : > { %v224_v47 = vld [vmem:[%s7506_s1 + $0x1a0] sm:$0xff]  ;;  %2508 = vmatpush1.bf16.msra.mxu1 %v4554_v50 }
  0x27   : > { %v348_v48 = vld [vmem:[%s7506_s1 + $0x580] sm:$0xff]  ;;  %v4563_v52 = vcombine.high %v220_v46, %v224_v47  ;;  %2548 = vmatprep.subr.bf16.mxu0 %v4683_v45  ;;  %v4562_v62 = vcombine.low %v220_v46, %v224_v47 }
  0x28   : > { %v352_v49 = vld [vmem:[%s7506_s1 + $0x5a0] sm:$0xff]  ;;  %2549 = vmatpush1.bf16.msra.mxu0 %v4682_v51 }
  0x29   : > { %v5716_v53 = vld [vmem:[%s5707_s26] sm:$0xff]  ;;  %v4691_v55 = vcombine.high %v348_v48, %v352_v49  ;;  %2509 = vmatprep.subr.bf16.mxu1 %v4563_v52  ;;  %v4690_v63 = vcombine.low %v348_v48, %v352_v49 }
  0x2a   : > { %v228_v56 = vld [vmem:[%s7506_s1 + $0x1c0] sm:$0xff]  ;;  %v5729_v58 = vcombine.high %v5716_v53, %v5716_v53  ;;  %2510 = vmatpush1.bf16.msra.mxu1 %v4562_v62 }
  0x2b   : > { %v232_v57 = vld [vmem:[%s7506_s1 + $0x1e0] sm:$0xff]  ;;  %2550 = vmatprep.subr.bf16.mxu0 %v4691_v55 }
  0x2c   : > { %v356_v59 = vld [vmem:[%s7506_s1 + $0x5c0] sm:$0xff]  ;;  %2529 = vmatprep.mubr.bf16.mxu1 %v5729_v58  ;;  %v4571_v0 = vcombine.high %v228_v56, %v232_v57  ;;  %v4570_v6 = vcombine.low %v228_v56, %v232_v57  ;;  %2551 = vmatpush1.bf16.msra.mxu0 %v4690_v63 }
  0x2d   : > { %v360_v60 = vld [vmem:[%s7506_s1 + $0x5e0] sm:$0xff] }
  0x2e   : > { %v4699_v1 = vcombine.high %v356_v59, %v360_v60  ;;  %v236_v2 = vld [vmem:[%s7506_s1 + $0x200] sm:$0xff]  ;;  %2511 = vmatprep.subr.bf16.mxu1 %v4571_v0  ;;  %v4698_v7 = vcombine.low %v356_v59, %v360_v60 }
  0x2f   : > { %v240_v3 = vld [vmem:[%s7506_s1 + $0x220] sm:$0xff]  ;;  %2512 = vmatpush1.bf16.msra.mxu1 %v4570_v6  ;;  %v173_v6 = vld [vmem:[%s7506_s1 + $0x8] sm:$0xff] }
  0x30   : > { %v364_v4 = vld [vmem:[%s7506_s1 + $0x600] sm:$0xff]  ;;  %v4579_v8 = vcombine.high %v236_v2, %v240_v3  ;;  %2552 = vmatprep.subr.bf16.mxu0 %v4699_v1  ;;  %v4578_v14 = vcombine.low %v236_v2, %v240_v3 }
  0x31   : > { %v368_v5 = vld [vmem:[%s7506_s1 + $0x620] sm:$0xff]  ;;  %2553 = vmatpush1.bf16.msra.mxu0 %v4698_v7  ;;  %v177_v7 = vld [vmem:[%s7506_s1 + $0x28] sm:$0xff] }
  0x32   : > { %v4707_v9 = vcombine.high %v364_v4, %v368_v5  ;;  %v244_v10 = vld [vmem:[%s7506_s1 + $0x240] sm:$0xff]  ;;  %2513 = vmatprep.subr.bf16.mxu1 %v4579_v8  ;;  %v4706_v15 = vcombine.low %v364_v4, %v368_v5 }
  0x33   : > { %v248_v11 = vld [vmem:[%s7506_s1 + $0x260] sm:$0xff]  ;;  %2514 = vmatpush1.bf16.msra.mxu1 %v4578_v14  ;;  %v181_v14 = vld [vmem:[%s7506_s1 + $0x48] sm:$0xff] }
  0x34   : > { %v372_v12 = vld [vmem:[%s7506_s1 + $0x640] sm:$0xff]  ;;  %v4587_v16 = vcombine.high %v244_v10, %v248_v11  ;;  %2554 = vmatprep.subr.bf16.mxu0 %v4707_v9  ;;  %v4586_v22 = vcombine.low %v244_v10, %v248_v11 }
  0x35   : > { %v376_v13 = vld [vmem:[%s7506_s1 + $0x660] sm:$0xff]  ;;  %2555 = vmatpush1.bf16.msra.mxu0 %v4706_v15  ;;  %v185_v15 = vld [vmem:[%s7506_s1 + $0x68] sm:$0xff] }
  0x36   : > { %v4715_v17 = vcombine.high %v372_v12, %v376_v13  ;;  %v252_v18 = vld [vmem:[%s7506_s1 + $0x280] sm:$0xff]  ;;  %2515 = vmatprep.subr.bf16.mxu1 %v4587_v16  ;;  %v4714_v23 = vcombine.low %v372_v12, %v376_v13  ;;  %v4517_v12 = vcombine.high %v173_v6, %v177_v7  ;;  %v5859_v16 = vcombine.low %v5716_v53, %v5716_v53 }
  0x37   : > { %v256_v19 = vld [vmem:[%s7506_s1 + $0x2a0] sm:$0xff]  ;;  %2516 = vmatpush1.bf16.msra.mxu1 %v4586_v22  ;;  %v4525_v53 = vcombine.high %v181_v14, %v185_v15 }
  0x38   : > { %v380_v20 = vld [vmem:[%s7506_s1 + $0x680] sm:$0xff]  ;;  %v4595_v24 = vcombine.high %v252_v18, %v256_v19  ;;  %2556 = vmatprep.subr.bf16.mxu0 %v4715_v17  ;;  %v4594_v30 = vcombine.low %v252_v18, %v256_v19  ;;  %v5868_v19 = vld [vmem:[%s5707_s26 + $0x10] sm:$0xff]  ;;  %s4444_s26 = sshll.u32 %s163_s9, 4  ;;  %s7465_s26 = int_to_ptr.vmem [resolvable:$true] %s4444_s26 }
  0x39   : > { %v384_v21 = vld [vmem:[%s7506_s1 + $0x6a0] sm:$0xff]  ;;  %2557 = vmatpush1.bf16.msra.mxu0 %v4714_v23  ;;  %s5491_s24 = scalar_lea.vmem %s7465_s26, 768  ;;  %p5498_p0 = scmp.lt.s32.totalorder %s7465_s26, %s5496_s25 }
  0x3a   : > { %v4723_v25 = vcombine.high %v380_v20, %v384_v21  ;;  %v260_v26 = vld [vmem:[%s7506_s1 + $0x2c0] sm:$0xff]  ;;  %2517 = vmatprep.subr.bf16.mxu1 %v4595_v24  ;;  %v4722_v31 = vcombine.low %v380_v20, %v384_v21  ;;  %v4516_v20 = vcombine.low %v173_v6, %v177_v7  ;;  %v5872_v21 = vcombine.low %v5719_v54, %v5719_v54  ;;  %v193_v54 = vld [vmem:[%s7506_s1 + $0xa8] sm:$0xff]  ;;  %p5492_p11 = scmp.ne.s32.totalorder %s7465_s26, %s5491_s24  ;;  %p5499_p1 = scmp.lt.s32.totalorder %s5497_s27, %s5491_s24 }
  0x3b   : > { %v264_v27 = vld [vmem:[%s7506_s1 + $0x2e0] sm:$0xff]  ;;  %2518 = vmatpush1.bf16.msra.mxu1 %v4594_v30  ;;  %v233_v7 = vld [vmem:[%s7506_s1 + $0x1e8] sm:$0xff] }
  0x3c   : > { %v388_v28 = vld [vmem:[%s7506_s1 + $0x6c0] sm:$0xff]  ;;  %v4603_v32 = vcombine.high %v260_v26, %v264_v27  ;;  %2558 = vmatprep.subr.bf16.mxu0 %v4723_v25  ;;  %v4602_v38 = vcombine.low %v260_v26, %v264_v27  ;;  %v189_v25 = vld [vmem:[%s7506_s1 + $0x88] sm:$0xff]  ;;  %v5888_v27 = vcombine.high %v5868_v19, %v5868_v19  ;;  %p5493_p12 = pnand %p5492_p11, %p5614_p5  ;;  %p5500_p2 = por %p5499_p1, %p5498_p0 }
  0x3d   : > { %v392_v29 = vld [vmem:[%s7506_s1 + $0x6e0] sm:$0xff]  ;;  %2559 = vmatpush1.bf16.msra.mxu0 %v4722_v31  ;;  %v4533_v30 = vcombine.high %v189_v25, %v193_v54 }
  0x3e   : > { %v4731_v33 = vcombine.high %v388_v28, %v392_v29  ;;  %v268_v34 = vld [vmem:[%s7506_s1 + $0x300] sm:$0xff]  ;;  %2519 = vmatprep.subr.bf16.mxu1 %v4603_v32  ;;  %v4730_v39 = vcombine.low %v388_v28, %v392_v29  ;;  %v4524_v28 = vcombine.low %v181_v14, %v185_v15  ;;  %v241_v15 = vld [vmem:[%s7506_s1 + $0x228] sm:$0xff]  ;;  %p5494_p13 = pneg %p5493_p12 }
  0x3f   : > { %v272_v35 = vld [vmem:[%s7506_s1 + $0x320] sm:$0xff]  ;;  %2520 = vmatpush1.bf16.msra.mxu1 %v4602_v38 }
  0x40   : > { %v396_v36 = vld [vmem:[%s7506_s1 + $0x700] sm:$0xff]  ;;  %v4611_v40 = vcombine.high %v268_v34, %v272_v35  ;;  %2560 = vmatprep.subr.bf16.mxu0 %v4731_v33  ;;  %v4610_v46 = vcombine.low %v268_v34, %v272_v35  ;;  %v197_v33 = vld [vmem:[%s7506_s1 + $0xc8] sm:$0xff]  ;;  %p5501_p3 = pnand %p5500_p2, %p5494_p13 }
  0x41   : > { %v400_v37 = vld [vmem:[%s7506_s1 + $0x720] sm:$0xff]  ;;  %2561 = vmatpush1.bf16.msra.mxu0 %v4730_v39  ;;  %v201_v35 = vld [vmem:[%s7506_s1 + $0xe8] sm:$0xff] }
  0x42   : > { %v4739_v41 = vcombine.high %v396_v36, %v400_v37  ;;  %v276_v42 = vld [vmem:[%s7506_s1 + $0x340] sm:$0xff]  ;;  %2521 = vmatprep.subr.bf16.mxu1 %v4611_v40  ;;  %v4738_v47 = vcombine.low %v396_v36, %v400_v37  ;;  %v4532_v36 = vcombine.low %v189_v25, %v193_v54  ;;  %v4541_v38 = vcombine.high %v197_v33, %v201_v35  ;;  %v249_v25 = vld [vmem:[%s7506_s1 + $0x268] sm:$0xff] }
  0x43   : > { %v280_v43 = vld [vmem:[%s7506_s1 + $0x360] sm:$0xff]  ;;  %2522 = vmatpush1.bf16.msra.mxu1 %v4610_v46 }
  0x44   : > { %v404_v44 = vld [vmem:[%s7506_s1 + $0x740] sm:$0xff]  ;;  %v4619_v48 = vcombine.high %v276_v42, %v280_v43  ;;  %2562 = vmatprep.subr.bf16.mxu0 %v4739_v41  ;;  %v4618_v56 = vcombine.low %v276_v42, %v280_v43  ;;  %v205_v41 = vld [vmem:[%s7506_s1 + $0x108] sm:$0xff] }
  0x45   : > { %v408_v45 = vld [vmem:[%s7506_s1 + $0x760] sm:$0xff]  ;;  %2563 = vmatpush1.bf16.msra.mxu0 %v4738_v47  ;;  %v209_v43 = vld [vmem:[%s7506_s1 + $0x128] sm:$0xff] }
  0x46   : > { %v4747_v49 = vcombine.high %v404_v44, %v408_v45  ;;  %v284_v50 = vld [vmem:[%s7506_s1 + $0x380] sm:$0xff]  ;;  %2523 = vmatprep.subr.bf16.mxu1 %v4619_v48  ;;  %v4746_v57 = vcombine.low %v404_v44, %v408_v45  ;;  %v4540_v44 = vcombine.low %v197_v33, %v201_v35  ;;  %v4549_v46 = vcombine.high %v205_v41, %v209_v43  ;;  %v257_v33 = vld [vmem:[%s7506_s1 + $0x2a8] sm:$0xff] }
  0x47   : > { %v288_v51 = vld [vmem:[%s7506_s1 + $0x3a0] sm:$0xff]  ;;  %2524 = vmatpush1.bf16.msra.mxu1 %v4618_v56 }
  0x48   : > { %v412_v52 = vld [vmem:[%s7506_s1 + $0x780] sm:$0xff]  ;;  %v4627_v59 = vcombine.high %v284_v50, %v288_v51  ;;  %2564 = vmatprep.subr.bf16.mxu0 %v4747_v49  ;;  %v4626_v2 = vcombine.low %v284_v50, %v288_v51  ;;  %v213_v49 = vld [vmem:[%s7506_s1 + $0x148] sm:$0xff] }
  0x49   : > { %v416_v55 = vld [vmem:[%s7506_s1 + $0x7a0] sm:$0xff]  ;;  %2565 = vmatpush1.bf16.msra.mxu0 %v4746_v57  ;;  %v217_v51 = vld [vmem:[%s7506_s1 + $0x168] sm:$0xff] }
  0x4a   : > { %v4755_v60 = vcombine.high %v412_v52, %v416_v55  ;;  %v292_v62 = vld [vmem:[%s7506_s1 + $0x3c0] sm:$0xff]  ;;  %2525 = vmatprep.subr.bf16.mxu1 %v4627_v59  ;;  %v4754_v3 = vcombine.low %v412_v52, %v416_v55  ;;  %v4548_v52 = vcombine.low %v205_v41, %v209_v43  ;;  %v4557_v56 = vcombine.high %v213_v49, %v217_v51  ;;  %v265_v41 = vld [vmem:[%s7506_s1 + $0x2e8] sm:$0xff] }
  0x4b   : > { %v296_v63 = vld [vmem:[%s7506_s1 + $0x3e0] sm:$0xff]  ;;  %2526 = vmatpush1.bf16.msra.mxu1 %v4626_v2 }
  0x4c   : > { %v420_v0 = vld [vmem:[%s7506_s1 + $0x7c0] sm:$0xff]  ;;  %v4635_v4 = vcombine.high %v292_v62, %v296_v63  ;;  %2566 = vmatprep.subr.bf16.mxu0 %v4755_v60  ;;  %v4634_v10 = vcombine.low %v292_v62, %v296_v63  ;;  %v221_v60 = vld [vmem:[%s7506_s1 + $0x188] sm:$0xff] }
  0x4d   : > { %v424_v1 = vld [vmem:[%s7506_s1 + $0x7e0] sm:$0xff]  ;;  %2567 = vmatpush1.bf16.msra.mxu0 %v4754_v3  ;;  %v225_v63 = vld [vmem:[%s7506_s1 + $0x1a8] sm:$0xff] }
  0x4e   : > { %v4763_v5 = vcombine.high %v420_v0, %v424_v1  ;;  %v428_v8 = vld [vmem:[%s7506_s1 + $0x800] sm:$0xff]  ;;  %2527 = vmatprep.subr.bf16.mxu1 %v4635_v4  ;;  %v4762_v11 = vcombine.low %v420_v0, %v424_v1  ;;  %v4556_v0 = vcombine.low %v213_v49, %v217_v51  ;;  %v4565_v2 = vcombine.high %v221_v60, %v225_v63  ;;  %v273_v49 = vld [vmem:[%s7506_s1 + $0x328] sm:$0xff] }
  0x4f   : > { %v432_v9 = vld [vmem:[%s7506_s1 + $0x820] sm:$0xff]  ;;  %2528 = vmatpush1.bf16.msra.mxu1 %v4634_v10 }
  0x50   : > { %2568 = vmatprep.subr.bf16.mxu0 %v4763_v5  ;;  %v4771_v13 = vcombine.high %v428_v8, %v432_v9  ;;  %v436_v17 = vld [vmem:[%s7506_s1 + $0x840] sm:$0xff]  ;;  %v4770_v22 = vcombine.low %v428_v8, %v432_v9  ;;  %2620 = vmatprep.subr.bf16.mxu1 %v4517_v12  ;;  %v229_v5 = vld [vmem:[%s7506_s1 + $0x1c8] sm:$0xff]  ;;  %v4564_v8 = vcombine.low %v221_v60, %v225_v63 }
  0x51   : > { %v440_v18 = vld [vmem:[%s7506_s1 + $0x860] sm:$0xff]  ;;  %2569 = vmatpush1.bf16.msra.mxu0 %v4762_v11  ;;  %v4573_v10 = vcombine.high %v229_v5, %v233_v7  ;;  %v281_v60 = vld [vmem:[%s7506_s1 + $0x368] sm:$0xff] }
  0x52   : > { %v444_v23 = vld [vmem:[%s7506_s1 + $0x880] sm:$0xff]  ;;  %2579 = vmatprep.subr.bf16.mxu0 %v4771_v13  ;;  %v4779_v26 = vcombine.high %v436_v17, %v440_v18  ;;  %2530 = vmatmul.mubr.bf16.vlgmr.msra.gmra.mrb[0].mxu1 %v5859_v16  ;;  %v4778_v29 = vcombine.low %v436_v17, %v440_v18  ;;  %v237_v13 = vld [vmem:[%s7506_s1 + $0x208] sm:$0xff]  ;;  %v4572_v17 = vcombine.low %v229_v5, %v233_v7 }
  0x53   : > { %v448_v24 = vld [vmem:[%s7506_s1 + $0x8a0] sm:$0xff]  ;;  %2621 = vmatpush1.bf16.msra.mxu1 %v4516_v20  ;;  %2652 = vmatprep.mubr.bf16.mxu1 %v5729_v58  ;;  %v4581_v20 = vcombine.high %v237_v13, %v241_v15  ;;  %v289_v5 = vld [vmem:[%s7506_s1 + $0x3a8] sm:$0xff] }
  0x54   : > { %2571 = vmatmul.mubr.bf16.vlgmr.msra.gmra.mrb[0].mxu0 %v5872_v21  ;;  %2622 = vmatprep.subr.bf16.mxu1 %v4525_v53  ;;  %v452_v31 = vld [vmem:[%s7506_s1 + $0x8c0] sm:$0xff]  ;;  %v4787_v34 = vcombine.high %v444_v23, %v448_v24  ;;  %v4786_v37 = vcombine.low %v444_v23, %v448_v24  ;;  %v245_v23 = vld [vmem:[%s7506_s1 + $0x248] sm:$0xff] }
  0x55   : > { %2580 = vmatpush1.bf16.msra.mxu0 %v4770_v22  ;;  %v456_v32 = vld [vmem:[%s7506_s1 + $0x8e0] sm:$0xff]  ;;  %2611 = vmatprep.mubr.bf16.mxu0 %v5888_v27 }
  0x56   : > { %2581 = vmatprep.subr.bf16.mxu0 %v4779_v26  ;;  %v460_v39 = vld [vmem:[%s7506_s1 + $0x900] sm:$0xff]  ;;  %v4795_v42 = vcombine.high %v452_v31, %v456_v32  ;;  %v4794_v45 = vcombine.low %v452_v31, %v456_v32  ;;  %v4580_v26 = vcombine.low %v237_v13, %v241_v15  ;;  %v253_v31 = vld [vmem:[%s7506_s1 + $0x288] sm:$0xff] }
  0x57   : > { %2623 = vmatpush1.bf16.msra.mxu1 %v4524_v28  ;;  %v464_v40 = vld [vmem:[%s7506_s1 + $0x920] sm:$0xff]  ;;  %v4589_v28 = vcombine.high %v245_v23, %v249_v25  ;;  %v297_v13 = vld [vmem:[%s7506_s1 + $0x3e8] sm:$0xff] }
  0x58   : > { %2624 = vmatprep.subr.bf16.mxu1 %v4533_v30  ;;  %v468_v47 = vld [vmem:[%s7506_s1 + $0x940] sm:$0xff]  ;;  %v4803_v50 = vcombine.high %v460_v39, %v464_v40  ;;  %v4802_v55 = vcombine.low %v460_v39, %v464_v40  ;;  %v261_v39 = vld [vmem:[%s7506_s1 + $0x2c8] sm:$0xff] }
  0x59   : > { %2582 = vmatpush1.bf16.msra.mxu0 %v4778_v29  ;;  %v472_v48 = vld [vmem:[%s7506_s1 + $0x960] sm:$0xff] }
  0x5a   : > { %2583 = vmatprep.subr.bf16.mxu0 %v4787_v34  ;;  %v476_v57 = vld [vmem:[%s7506_s1 + $0x980] sm:$0xff]  ;;  %v4811_v62 = vcombine.high %v468_v47, %v472_v48  ;;  %v4810_v1 = vcombine.low %v468_v47, %v472_v48  ;;  %v4588_v34 = vcombine.low %v245_v23, %v249_v25  ;;  %v269_v47 = vld [vmem:[%s7506_s1 + $0x308] sm:$0xff]  ;;  %v178_v23 = vld [vmem:[%s7506_s1 + $0x30] sm:$0xff] }
  0x5b   : > { %2625 = vmatpush1.bf16.msra.mxu1 %v4532_v36  ;;  %v480_v59 = vld [vmem:[%s7506_s1 + $0x9a0] sm:$0xff]  ;;  %v4597_v36 = vcombine.high %v253_v31, %v257_v33 }
  0x5c   : > { %2626 = vmatprep.subr.bf16.mxu1 %v4541_v38  ;;  %v484_v3 = vld [vmem:[%s7506_s1 + $0x9c0] sm:$0xff]  ;;  %v4819_v6 = vcombine.high %v476_v57, %v480_v59  ;;  %v4818_v9 = vcombine.low %v476_v57, %v480_v59  ;;  %v277_v57 = vld [vmem:[%s7506_s1 + $0x348] sm:$0xff] }
  0x5d   : > { %2584 = vmatpush1.bf16.msra.mxu0 %v4786_v37  ;;  %v488_v4 = vld [vmem:[%s7506_s1 + $0x9e0] sm:$0xff] }
  0x5e   : > { %2585 = vmatprep.subr.bf16.mxu0 %v4795_v42  ;;  %v492_v11 = vld [vmem:[%s7506_s1 + $0xa00] sm:$0xff]  ;;  %v4827_v14 = vcombine.high %v484_v3, %v488_v4  ;;  %v4826_v18 = vcombine.low %v484_v3, %v488_v4  ;;  %v4596_v42 = vcombine.low %v253_v31, %v257_v33  ;;  %v285_v3 = vld [vmem:[%s7506_s1 + $0x388] sm:$0xff]  ;;  %v186_v31 = vld [vmem:[%s7506_s1 + $0x70] sm:$0xff] }
  0x5f   : > { %2627 = vmatpush1.bf16.msra.mxu1 %v4540_v44  ;;  %v496_v12 = vld [vmem:[%s7506_s1 + $0xa20] sm:$0xff]  ;;  %v4605_v44 = vcombine.high %v261_v39, %v265_v41 }
  0x60   : > { %2628 = vmatprep.subr.bf16.mxu1 %v4549_v46  ;;  %v500_v22 = vld [vmem:[%s7506_s1 + $0xa40] sm:$0xff]  ;;  %v4835_v24 = vcombine.high %v492_v11, %v496_v12  ;;  %v4834_v54 = vcombine.low %v492_v11, %v496_v12  ;;  %v293_v11 = vld [vmem:[%s7506_s1 + $0x3c8] sm:$0xff] }
  0x61   : > { %2586 = vmatpush1.bf16.msra.mxu0 %v4794_v45  ;;  %v504_v53 = vld [vmem:[%s7506_s1 + $0xa60] sm:$0xff] }
  0x62   : > { %2587 = vmatprep.subr.bf16.mxu0 %v4803_v50  ;;  %v508_v29 = vld [vmem:[%s7506_s1 + $0xa80] sm:$0xff]  ;;  %v4843_v32 = vcombine.high %v500_v22, %v504_v53  ;;  %v4842_v35 = vcombine.low %v500_v22, %v504_v53  ;;  %v4604_v50 = vcombine.low %v261_v39, %v265_v41  ;;  %v174_v22 = vld [vmem:[%s7506_s1 + $0x10] sm:$0xff] }
  0x63   : > { %2629 = vmatpush1.bf16.msra.mxu1 %v4548_v52  ;;  %v512_v30 = vld [vmem:[%s7506_s1 + $0xaa0] sm:$0xff]  ;;  %v4613_v52 = vcombine.high %v269_v47, %v273_v49  ;;  %v194_v39 = vld [vmem:[%s7506_s1 + $0xb0] sm:$0xff] }
  0x64   : > { %2630 = vmatprep.subr.bf16.mxu1 %v4557_v56  ;;  %v516_v37 = vld [vmem:[%s7506_s1 + $0xac0] sm:$0xff]  ;;  %v4851_v40 = vcombine.high %v508_v29, %v512_v30  ;;  %v4850_v43 = vcombine.low %v508_v29, %v512_v30  ;;  %v182_v29 = vld [vmem:[%s7506_s1 + $0x50] sm:$0xff]  ;;  %v4519_v30 = vcombine.high %v174_v22, %v178_v23 }
  0x65   : > { %2588 = vmatpush1.bf16.msra.mxu0 %v4802_v55  ;;  %v520_v38 = vld [vmem:[%s7506_s1 + $0xae0] sm:$0xff]  ;;  %v4526_v41 = vcombine.low %v182_v29, %v186_v31 }
  0x66   : > { %2589 = vmatprep.subr.bf16.mxu0 %v4811_v62  ;;  %v524_v45 = vld [vmem:[%s7506_s1 + $0xb00] sm:$0xff]  ;;  %v4859_v48 = vcombine.high %v516_v37, %v520_v38  ;;  %v4858_v51 = vcombine.low %v516_v37, %v520_v38  ;;  %v4612_v62 = vcombine.low %v269_v47, %v273_v49  ;;  %v321_v37 = vld [vmem:[%s7506_s1 + $0x4a8] sm:$0xff]  ;;  %v190_v38 = vld [vmem:[%s7506_s1 + $0x90] sm:$0xff] }
  0x67   : > { %2631 = vmatpush1.bf16.msra.mxu1 %v4556_v0  ;;  %v528_v46 = vld [vmem:[%s7506_s1 + $0xb20] sm:$0xff]  ;;  %v4621_v0 = vcombine.high %v277_v57, %v281_v60  ;;  %v202_v47 = vld [vmem:[%s7506_s1 + $0xf0] sm:$0xff]  ;;  %v4534_v49 = vcombine.low %v190_v38, %v194_v39 }
  0x68   : > { %2632 = vmatprep.subr.bf16.mxu1 %v4565_v2  ;;  %v532_v55 = vld [vmem:[%s7506_s1 + $0xb40] sm:$0xff]  ;;  %v4867_v59 = vcombine.high %v524_v45, %v528_v46  ;;  %v4866_v63 = vcombine.low %v524_v45, %v528_v46  ;;  %v198_v45 = vld [vmem:[%s7506_s1 + $0xd0] sm:$0xff]  ;;  %v4535_v46 = vcombine.high %v190_v38, %v194_v39 }
  0x69   : > { %2590 = vmatpush1.bf16.msra.mxu0 %v4810_v1  ;;  %v536_v56 = vld [vmem:[%s7506_s1 + $0xb60] sm:$0xff]  ;;  %v250_v38 = vld [vmem:[%s7506_s1 + $0x270] sm:$0xff] }
  0x6a   : > { %2591 = vmatprep.subr.bf16.mxu0 %v4819_v6  ;;  %v540_v1 = vld [vmem:[%s7506_s1 + $0xb80] sm:$0xff]  ;;  %v4875_v4 = vcombine.high %v532_v55, %v536_v56  ;;  %v4620_v6 = vcombine.low %v277_v57, %v281_v60  ;;  %v4874_v7 = vcombine.low %v532_v55, %v536_v56  ;;  %v206_v55 = vld [vmem:[%s7506_s1 + $0x110] sm:$0xff]  ;;  %v4543_v56 = vcombine.high %v198_v45, %v202_v47 }
  0x6b   : > { %2633 = vmatpush1.bf16.msra.mxu1 %v4564_v8  ;;  %v544_v2 = vld [vmem:[%s7506_s1 + $0xba0] sm:$0xff]  ;;  %v4629_v8 = vcombine.high %v285_v3, %v289_v5  ;;  %v210_v57 = vld [vmem:[%s7506_s1 + $0x130] sm:$0xff]  ;;  %v4542_v60 = vcombine.low %v198_v45, %v202_v47 }
  0x6c   : > { %2634 = vmatprep.subr.bf16.mxu1 %v4573_v10  ;;  %v552_v10 = vld [vmem:[%s7506_s1 + $0xbe0] sm:$0xff]  ;;  %v4883_v12 = vcombine.high %v540_v1, %v544_v2  ;;  %v4882_v15 = vcombine.low %v540_v1, %v544_v2  ;;  %v214_v1 = vld [vmem:[%s7506_s1 + $0x150] sm:$0xff]  ;;  %v4551_v2 = vcombine.high %v206_v55, %v210_v57 }
  0x6d   : > { %2592 = vmatpush1.bf16.msra.mxu0 %v4818_v9  ;;  %v548_v9 = vld [vmem:[%s7506_s1 + $0xbc0] sm:$0xff]  ;;  %v258_v45 = vld [vmem:[%s7506_s1 + $0x2b0] sm:$0xff] }
  0x6e   : > { %2593 = vmatprep.subr.bf16.mxu0 %v4827_v14  ;;  %v4628_v14 = vcombine.low %v285_v3, %v289_v5  ;;  %v4891_v53 = vcombine.high %v548_v9, %v552_v10  ;;  %v4890_v25 = vcombine.low %v548_v9, %v552_v10  ;;  %v218_v3 = vld [vmem:[%s7506_s1 + $0x170] sm:$0xff]  ;;  %v4550_v5 = vcombine.low %v206_v55, %v210_v57 }
  0x6f   : > { %2635 = vmatpush1.bf16.msra.mxu1 %v4572_v17  ;;  %v4637_v17 = vcombine.high %v293_v11, %v297_v13  ;;  %v222_v9 = vld [vmem:[%s7506_s1 + $0x190] sm:$0xff]  ;;  %v4559_v10 = vcombine.high %v214_v1, %v218_v3 }
  0x70   : > { %2636 = vmatprep.subr.bf16.mxu1 %v4581_v20  ;;  %v305_v20 = vld [vmem:[%s7506_s1 + $0x428] sm:$0xff]  ;;  %v266_v55 = vld [vmem:[%s7506_s1 + $0x2f0] sm:$0xff] }
  0x71   : > { %2594 = vmatpush1.bf16.msra.mxu0 %v4826_v18  ;;  %v301_v18 = vld [vmem:[%s7506_s1 + $0x408] sm:$0xff] }
  0x72   : > { %2595 = vmatprep.subr.bf16.mxu0 %v4835_v24  ;;  %v4636_v24 = vcombine.low %v293_v11, %v297_v13  ;;  %v4644_v33 = vcombine.low %v301_v18, %v305_v20  ;;  %v226_v11 = vld [vmem:[%s7506_s1 + $0x1b0] sm:$0xff]  ;;  %v4558_v13 = vcombine.low %v214_v1, %v218_v3 }
  0x73   : > { %2637 = vmatpush1.bf16.msra.mxu1 %v4580_v26  ;;  %v4645_v26 = vcombine.high %v301_v18, %v305_v20  ;;  %v230_v18 = vld [vmem:[%s7506_s1 + $0x1d0] sm:$0xff]  ;;  %v4567_v20 = vcombine.high %v222_v9, %v226_v11 }
  0x74   : > { %2638 = vmatprep.subr.bf16.mxu1 %v4589_v28  ;;  %v313_v28 = vld [vmem:[%s7506_s1 + $0x468] sm:$0xff]  ;;  %v274_v1 = vld [vmem:[%s7506_s1 + $0x330] sm:$0xff] }
  0x75   : > { %2596 = vmatpush1.bf16.msra.mxu0 %v4834_v54  ;;  %v309_v54 = vld [vmem:[%s7506_s1 + $0x448] sm:$0xff] }
  0x76   : > { %2597 = vmatprep.subr.bf16.mxu0 %v4843_v32  ;;  %v6076_v32 = vcombine.low %v5868_v19, %v5868_v19  ;;  %v4527_v19 = vcombine.high %v182_v29, %v186_v31  ;;  %v242_v29 = vld [vmem:[%s7506_s1 + $0x230] sm:$0xff] }
  0x77   : > { %2639 = vmatpush1.bf16.msra.mxu1 %v4588_v34  ;;  %v4518_v34 = vcombine.low %v174_v22, %v178_v23  ;;  %v234_v22 = vld [vmem:[%s7506_s1 + $0x1f0] sm:$0xff]  ;;  %v4566_v23 = vcombine.low %v222_v9, %v226_v11 }
  0x78   : > { %2640 = vmatprep.subr.bf16.mxu1 %v4597_v36  ;;  %v317_v36 = vld [vmem:[%s7506_s1 + $0x488] sm:$0xff]  ;;  %v4574_v31 = vcombine.low %v230_v18, %v234_v22  ;;  %v282_v9 = vld [vmem:[%s7506_s1 + $0x370] sm:$0xff] }
  0x79   : > { %2598 = vmatpush1.bf16.msra.mxu0 %v4842_v35  ;;  %v4653_v35 = vcombine.high %v309_v54, %v313_v28 }
  0x7a   : > { %2599 = vmatprep.subr.bf16.mxu0 %v4851_v40  ;;  %v4652_v40 = vcombine.low %v309_v54, %v313_v28  ;;  %v238_v54 = vld [vmem:[%s7506_s1 + $0x210] sm:$0xff]  ;;  %v4575_v28 = vcombine.high %v230_v18, %v234_v22 }
  0x7b   : > { %2641 = vmatpush1.bf16.msra.mxu1 %v4596_v42  ;;  %v4661_v42 = vcombine.high %v317_v36, %v321_v37  ;;  %v4582_v39 = vcombine.low %v238_v54, %v242_v29  ;;  %v290_v18 = vld [vmem:[%s7506_s1 + $0x3b0] sm:$0xff] }
  0x7c   : > { %2642 = vmatprep.subr.bf16.mxu1 %v4605_v44  ;;  %v329_v44 = vld [vmem:[%s7506_s1 + $0x4e8] sm:$0xff] }
  0x7d   : > { %2600 = vmatpush1.bf16.msra.mxu0 %v4850_v43  ;;  %v325_v43 = vld [vmem:[%s7506_s1 + $0x4c8] sm:$0xff] }
  0x7e   : > { %2601 = vmatprep.subr.bf16.mxu0 %v4859_v48  ;;  %v4660_v48 = vcombine.low %v317_v36, %v321_v37  ;;  %v246_v36 = vld [vmem:[%s7506_s1 + $0x250] sm:$0xff]  ;;  %v4583_v37 = vcombine.high %v238_v54, %v242_v29 }
  0x7f   : > { %2643 = vmatpush1.bf16.msra.mxu1 %v4604_v50  ;;  %v4669_v50 = vcombine.high %v325_v43, %v329_v44  ;;  %v4590_v47 = vcombine.low %v246_v36, %v250_v38  ;;  %v298_v54 = vld [vmem:[%s7506_s1 + $0x3f0] sm:$0xff] }
  0x80   : > { %2644 = vmatprep.subr.bf16.mxu1 %v4613_v52  ;;  %v337_v52 = vld [vmem:[%s7506_s1 + $0x528] sm:$0xff] }
  0x81   : > { %2602 = vmatpush1.bf16.msra.mxu0 %v4858_v51  ;;  %v333_v51 = vld [vmem:[%s7506_s1 + $0x508] sm:$0xff] }
  0x82   : > { %2603 = vmatprep.subr.bf16.mxu0 %v4867_v59  ;;  %v4668_v59 = vcombine.low %v325_v43, %v329_v44  ;;  %v385_v43 = vld [vmem:[%s7506_s1 + $0x6a8] sm:$0xff]  ;;  %v254_v44 = vld [vmem:[%s7506_s1 + $0x290] sm:$0xff] }
  0x83   : > { %2645 = vmatpush1.bf16.msra.mxu1 %v4612_v62  ;;  %v4677_v62 = vcombine.high %v333_v51, %v337_v52  ;;  %v4598_v57 = vcombine.low %v254_v44, %v258_v45 }
  0x84   : > { %2646 = vmatprep.subr.bf16.mxu1 %v4621_v0  ;;  %v345_v0 = vld [vmem:[%s7506_s1 + $0x568] sm:$0xff] }
  0x85   : > { %2604 = vmatpush1.bf16.msra.mxu0 %v4866_v63  ;;  %v341_v63 = vld [vmem:[%s7506_s1 + $0x548] sm:$0xff] }
  0x86   : > { %2605 = vmatprep.subr.bf16.mxu0 %v4875_v4  ;;  %v4676_v4 = vcombine.low %v333_v51, %v337_v52  ;;  %v393_v51 = vld [vmem:[%s7506_s1 + $0x6e8] sm:$0xff]  ;;  %v262_v52 = vld [vmem:[%s7506_s1 + $0x2d0] sm:$0xff] }
  0x87   : > { %2647 = vmatpush1.bf16.msra.mxu1 %v4620_v6  ;;  %v4685_v6 = vcombine.high %v341_v63, %v345_v0  ;;  %v4606_v3 = vcombine.low %v262_v52, %v266_v55 }
  0x88   : > { %2648 = vmatprep.subr.bf16.mxu1 %v4629_v8  ;;  %v353_v8 = vld [vmem:[%s7506_s1 + $0x5a8] sm:$0xff] }
  0x89   : > { %2606 = vmatpush1.bf16.msra.mxu0 %v4874_v7  ;;  %v349_v7 = vld [vmem:[%s7506_s1 + $0x588] sm:$0xff] }
  0x8a   : > { %2607 = vmatprep.subr.bf16.mxu0 %v4883_v12  ;;  %v4684_v12 = vcombine.low %v341_v63, %v345_v0  ;;  %v401_v63 = vld [vmem:[%s7506_s1 + $0x728] sm:$0xff]  ;;  %v270_v0 = vld [vmem:[%s7506_s1 + $0x310] sm:$0xff] }
  0x8b   : > { %2649 = vmatpush1.bf16.msra.mxu1 %v4628_v14  ;;  %v4693_v14 = vcombine.high %v349_v7, %v353_v8  ;;  %v4614_v11 = vcombine.low %v270_v0, %v274_v1 }
  0x8c   : > { %2650 = vmatprep.subr.bf16.mxu1 %v4637_v17  ;;  %v361_v17 = vld [vmem:[%s7506_s1 + $0x5e8] sm:$0xff] }
  0x8d   : > { %2608 = vmatpush1.bf16.msra.mxu0 %v4882_v15  ;;  %v357_v15 = vld [vmem:[%s7506_s1 + $0x5c8] sm:$0xff] }
  0x8e   : > { %2609 = vmatprep.subr.bf16.mxu0 %v4891_v53  ;;  %v4692_v53 = vcombine.low %v349_v7, %v353_v8  ;;  %v409_v7 = vld [vmem:[%s7506_s1 + $0x768] sm:$0xff]  ;;  %v278_v8 = vld [vmem:[%s7506_s1 + $0x350] sm:$0xff] }
  0x8f   : > { %2651 = vmatpush1.bf16.msra.mxu1 %v4636_v24  ;;  %v4701_v24 = vcombine.high %v357_v15, %v361_v17  ;;  %v4622_v22 = vcombine.low %v278_v8, %v282_v9 }
  0x90   : > { %2661 = vmatprep.subr.bf16.mxu1 %v4645_v26  ;;  %v369_v26 = vld [vmem:[%s7506_s1 + $0x628] sm:$0xff] }
  0x91   : > { %2610 = vmatpush1.bf16.msra.mxu0 %v4890_v25  ;;  %v365_v25 = vld [vmem:[%s7506_s1 + $0x608] sm:$0xff] }
  0x92   : > { %2743 = vmatprep.subr.bf16.mxu0 %v4519_v30  ;;  %2653 = vmatmul.mubr.bf16.vlgmr.msra.gmra.mrb[4].mxu1 %v5859_v16  ;;  %v4700_v30 = vcombine.low %v357_v15, %v361_v17  ;;  %v417_v15 = vld [vmem:[%s7506_s1 + $0x7a8] sm:$0xff]  ;;  %v286_v17 = vld [vmem:[%s7506_s1 + $0x390] sm:$0xff] }
  0x93   : > { %2662 = vmatpush1.bf16.msra.mxu1 %v4644_v33  ;;  %2693 = vmatprep.mubr.bf16.mxu1 %v5739_v61  ;;  %v4709_v33 = vcombine.high %v365_v25, %v369_v26  ;;  %v4630_v29 = vcombine.low %v286_v17, %v290_v18 }
  0x94   : > { %2612 = vmatmul.mubr.bf16.vlgmr.msra.gmra.mrb[0].mxu0 %v6076_v32  ;;  %2663 = vmatprep.subr.bf16.mxu1 %v4653_v35  ;;  %v377_v35 = vld [vmem:[%s7506_s1 + $0x668] sm:$0xff] }
  0x95   : > { %2744 = vmatpush1.bf16.msra.mxu0 %v4518_v34  ;;  %2775 = vmatprep.mubr.bf16.mxu0 %v5729_v58  ;;  %v373_v34 = vld [vmem:[%s7506_s1 + $0x648] sm:$0xff] }
  0x96   : > { %2745 = vmatprep.subr.bf16.mxu0 %v4527_v19  ;;  %v4708_v19 = vcombine.low %v365_v25, %v369_v26  ;;  %v425_v25 = vld [vmem:[%s7506_s1 + $0x7e8] sm:$0xff]  ;;  %v294_v26 = vld [vmem:[%s7506_s1 + $0x3d0] sm:$0xff] }
  0x97   : > { %2664 = vmatpush1.bf16.msra.mxu1 %v4652_v40  ;;  %v4717_v40 = vcombine.high %v373_v34, %v377_v35 }
  0x98   : > { %2665 = vmatprep.subr.bf16.mxu1 %v4661_v42  ;;  %v381_v42 = vld [vmem:[%s7506_s1 + $0x688] sm:$0xff] }
  0x99   : > { %2746 = vmatpush1.bf16.msra.mxu0 %v4526_v41  ;;  %v4591_v41 = vcombine.high %v246_v36, %v250_v38  ;;  %v306_v36 = vld [vmem:[%s7506_s1 + $0x430] sm:$0xff]  ;;  %v4638_v38 = vcombine.low %v294_v26, %v298_v54 }
  0x9a   : > { %2747 = vmatprep.subr.bf16.mxu0 %v4535_v46  ;;  %v4716_v46 = vcombine.low %v373_v34, %v377_v35  ;;  %v433_v34 = vld [vmem:[%s7506_s1 + $0x828] sm:$0xff]  ;;  %v302_v35 = vld [vmem:[%s7506_s1 + $0x410] sm:$0xff] }
  0x9b   : > { %2666 = vmatpush1.bf16.msra.mxu1 %v4660_v48  ;;  %v4725_v48 = vcombine.high %v381_v42, %v385_v43 }
  0x9c   : > { %2667 = vmatprep.subr.bf16.mxu1 %v4669_v50  ;;  %v389_v50 = vld [vmem:[%s7506_s1 + $0x6c8] sm:$0xff] }
  0x9d   : > { %2748 = vmatpush1.bf16.msra.mxu0 %v4534_v49  ;;  %v4599_v49 = vcombine.high %v254_v44, %v258_v45  ;;  %v4646_v45 = vcombine.low %v302_v35, %v306_v36 }
  0x9e   : > { %2749 = vmatprep.subr.bf16.mxu0 %v4543_v56  ;;  %v4724_v56 = vcombine.low %v381_v42, %v385_v43  ;;  %v310_v42 = vld [vmem:[%s7506_s1 + $0x450] sm:$0xff] }
  0x9f   : > { %2668 = vmatpush1.bf16.msra.mxu1 %v4668_v59  ;;  %v4733_v59 = vcombine.high %v389_v50, %v393_v51  ;;  %v314_v43 = vld [vmem:[%s7506_s1 + $0x470] sm:$0xff] }
  0xa0   : > { %2669 = vmatprep.subr.bf16.mxu1 %v4677_v62  ;;  %v397_v62 = vld [vmem:[%s7506_s1 + $0x708] sm:$0xff] }
  0xa1   : > { %2750 = vmatpush1.bf16.msra.mxu0 %v4542_v60  ;;  %v4607_v60 = vcombine.high %v262_v52, %v266_v55  ;;  %v4654_v55 = vcombine.low %v310_v42, %v314_v43 }
  0xa2   : > { %2751 = vmatprep.subr.bf16.mxu0 %v4551_v2  ;;  %v4732_v2 = vcombine.low %v389_v50, %v393_v51  ;;  %v318_v50 = vld [vmem:[%s7506_s1 + $0x490] sm:$0xff] }
  0xa3   : > { %2670 = vmatpush1.bf16.msra.mxu1 %v4676_v4  ;;  %v4741_v4 = vcombine.high %v397_v62, %v401_v63  ;;  %v322_v51 = vld [vmem:[%s7506_s1 + $0x4b0] sm:$0xff] }
  0xa4   : > { %2671 = vmatprep.subr.bf16.mxu1 %v4685_v6  ;;  %v405_v6 = vld [vmem:[%s7506_s1 + $0x748] sm:$0xff] }
  0xa5   : > { %2752 = vmatpush1.bf16.msra.mxu0 %v4550_v5  ;;  %v4615_v5 = vcombine.high %v270_v0, %v274_v1  ;;  %v4662_v1 = vcombine.low %v318_v50, %v322_v51 }
  0xa6   : > { %2753 = vmatprep.subr.bf16.mxu0 %v4559_v10  ;;  %v4740_v10 = vcombine.low %v397_v62, %v401_v63  ;;  %v326_v62 = vld [vmem:[%s7506_s1 + $0x4d0] sm:$0xff] }
  0xa7   : > { %2672 = vmatpush1.bf16.msra.mxu1 %v4684_v12  ;;  %v4749_v12 = vcombine.high %v405_v6, %v409_v7  ;;  %v330_v63 = vld [vmem:[%s7506_s1 + $0x4f0] sm:$0xff] }
  0xa8   : > { %2673 = vmatprep.subr.bf16.mxu1 %v4693_v14  ;;  %v413_v14 = vld [vmem:[%s7506_s1 + $0x788] sm:$0xff] }
  0xa9   : > { %2754 = vmatpush1.bf16.msra.mxu0 %v4558_v13  ;;  %v4623_v13 = vcombine.high %v278_v8, %v282_v9  ;;  %v4670_v9 = vcombine.low %v326_v62, %v330_v63 }
  0xaa   : > { %2755 = vmatprep.subr.bf16.mxu0 %v4567_v20  ;;  %v4748_v20 = vcombine.low %v405_v6, %v409_v7  ;;  %v334_v6 = vld [vmem:[%s7506_s1 + $0x510] sm:$0xff] }
  0xab   : > { %2674 = vmatpush1.bf16.msra.mxu1 %v4692_v53  ;;  %v4757_v53 = vcombine.high %v413_v14, %v417_v15  ;;  %v338_v7 = vld [vmem:[%s7506_s1 + $0x530] sm:$0xff] }
  0xac   : > { %2675 = vmatprep.subr.bf16.mxu1 %v4701_v24  ;;  %v421_v24 = vld [vmem:[%s7506_s1 + $0x7c8] sm:$0xff] }
  0xad   : > { %2756 = vmatpush1.bf16.msra.mxu0 %v4566_v23  ;;  %v4631_v23 = vcombine.high %v286_v17, %v290_v18  ;;  %v4678_v18 = vcombine.low %v334_v6, %v338_v7 }
  0xae   : > { %2757 = vmatprep.subr.bf16.mxu0 %v4575_v28  ;;  %v4756_v28 = vcombine.low %v413_v14, %v417_v15  ;;  %v342_v14 = vld [vmem:[%s7506_s1 + $0x550] sm:$0xff] }
  0xaf   : > { %2676 = vmatpush1.bf16.msra.mxu1 %v4700_v30  ;;  %v4765_v30 = vcombine.high %v421_v24, %v425_v25  ;;  %v346_v15 = vld [vmem:[%s7506_s1 + $0x570] sm:$0xff] }
  0xb0   : > { %2677 = vmatprep.subr.bf16.mxu1 %v4709_v33  ;;  %v429_v33 = vld [vmem:[%s7506_s1 + $0x808] sm:$0xff] }
  0xb1   : > { %2758 = vmatpush1.bf16.msra.mxu0 %v4574_v31  ;;  %v4639_v31 = vcombine.high %v294_v26, %v298_v54  ;;  %v4772_v44 = vcombine.low %v429_v33, %v433_v34  ;;  %v4686_v54 = vcombine.low %v342_v14, %v346_v15 }
  0xb2   : > { %2759 = vmatprep.subr.bf16.mxu0 %v4583_v37  ;;  %v4764_v37 = vcombine.low %v421_v24, %v425_v25  ;;  %v350_v24 = vld [vmem:[%s7506_s1 + $0x590] sm:$0xff] }
  0xb3   : > { %2678 = vmatpush1.bf16.msra.mxu1 %v4708_v19  ;;  %v4773_v19 = vcombine.high %v429_v33, %v433_v34  ;;  %v354_v25 = vld [vmem:[%s7506_s1 + $0x5b0] sm:$0xff] }
  0xb4   : > { %2679 = vmatprep.subr.bf16.mxu1 %v4717_v40  ;;  %v437_v40 = vld [vmem:[%s7506_s1 + $0x848] sm:$0xff]  ;;  %v358_v33 = vld [vmem:[%s7506_s1 + $0x5d0] sm:$0xff] }
  0xb5   : > { %2760 = vmatpush1.bf16.msra.mxu0 %v4582_v39  ;;  %v4647_v39 = vcombine.high %v302_v35, %v306_v36  ;;  %v362_v34 = vld [vmem:[%s7506_s1 + $0x5f0] sm:$0xff]  ;;  %v4694_v36 = vcombine.low %v350_v24, %v354_v25 }
  0xb6   : > { %2761 = vmatprep.subr.bf16.mxu0 %v4591_v41  ;;  %v441_v41 = vld [vmem:[%s7506_s1 + $0x868] sm:$0xff] }
  0xb7   : > { %2680 = vmatpush1.bf16.msra.mxu1 %v4716_v46  ;;  %v4781_v46 = vcombine.high %v437_v40, %v441_v41  ;;  %v4780_v52 = vcombine.low %v437_v40, %v441_v41  ;;  %v366_v40 = vld [vmem:[%s7506_s1 + $0x610] sm:$0xff] }
  0xb8   : > { %2681 = vmatprep.subr.bf16.mxu1 %v4725_v48  ;;  %v445_v48 = vld [vmem:[%s7506_s1 + $0x888] sm:$0xff]  ;;  %v370_v41 = vld [vmem:[%s7506_s1 + $0x630] sm:$0xff] }
  0xb9   : > { %2762 = vmatpush1.bf16.msra.mxu0 %v4590_v47  ;;  %v4655_v47 = vcombine.high %v310_v42, %v314_v43  ;;  %v4702_v43 = vcombine.low %v358_v33, %v362_v34 }
  0xba   : > { %2763 = vmatprep.subr.bf16.mxu0 %v4599_v49  ;;  %v449_v49 = vld [vmem:[%s7506_s1 + $0x8a8] sm:$0xff] }
  0xbb   : > { %2682 = vmatpush1.bf16.msra.mxu1 %v4724_v56  ;;  %v4789_v56 = vcombine.high %v445_v48, %v449_v49  ;;  %v4788_v0 = vcombine.low %v445_v48, %v449_v49  ;;  %v374_v48 = vld [vmem:[%s7506_s1 + $0x650] sm:$0xff] }
  0xbc   : > { %2683 = vmatprep.subr.bf16.mxu1 %v4733_v59  ;;  %v453_v59 = vld [vmem:[%s7506_s1 + $0x8c8] sm:$0xff]  ;;  %v378_v49 = vld [vmem:[%s7506_s1 + $0x670] sm:$0xff] }
  0xbd   : > { %2764 = vmatpush1.bf16.msra.mxu0 %v4598_v57  ;;  %v4663_v57 = vcombine.high %v318_v50, %v322_v51  ;;  %v4710_v51 = vcombine.low %v366_v40, %v370_v41 }
  0xbe   : > { %2765 = vmatprep.subr.bf16.mxu0 %v4607_v60  ;;  %v457_v60 = vld [vmem:[%s7506_s1 + $0x8e8] sm:$0xff] }
  0xbf   : > { %2684 = vmatpush1.bf16.msra.mxu1 %v4732_v2  ;;  %v4797_v2 = vcombine.high %v453_v59, %v457_v60  ;;  %v4796_v8 = vcombine.low %v453_v59, %v457_v60  ;;  %v382_v59 = vld [vmem:[%s7506_s1 + $0x690] sm:$0xff] }
  0xc0   : > { %2685 = vmatprep.subr.bf16.mxu1 %v4741_v4  ;;  %v461_v4 = vld [vmem:[%s7506_s1 + $0x908] sm:$0xff]  ;;  %v386_v60 = vld [vmem:[%s7506_s1 + $0x6b0] sm:$0xff] }
  0xc1   : > { %2766 = vmatpush1.bf16.msra.mxu0 %v4606_v3  ;;  %v4671_v3 = vcombine.high %v326_v62, %v330_v63  ;;  %v4718_v63 = vcombine.low %v374_v48, %v378_v49 }
  0xc2   : > { %2767 = vmatprep.subr.bf16.mxu0 %v4615_v5  ;;  %v465_v5 = vld [vmem:[%s7506_s1 + $0x928] sm:$0xff] }
  0xc3   : > { %2686 = vmatpush1.bf16.msra.mxu1 %v4740_v10  ;;  %v4805_v10 = vcombine.high %v461_v4, %v465_v5  ;;  %v4804_v17 = vcombine.low %v461_v4, %v465_v5  ;;  %v390_v4 = vld [vmem:[%s7506_s1 + $0x6d0] sm:$0xff] }
  0xc4   : > { %2687 = vmatprep.subr.bf16.mxu1 %v4749_v12  ;;  %v469_v12 = vld [vmem:[%s7506_s1 + $0x948] sm:$0xff]  ;;  %v394_v5 = vld [vmem:[%s7506_s1 + $0x6f0] sm:$0xff] }
  0xc5   : > { %2768 = vmatpush1.bf16.msra.mxu0 %v4614_v11  ;;  %v4679_v11 = vcombine.high %v334_v6, %v338_v7  ;;  %v4726_v7 = vcombine.low %v382_v59, %v386_v60 }
  0xc6   : > { %2769 = vmatprep.subr.bf16.mxu0 %v4623_v13  ;;  %v473_v13 = vld [vmem:[%s7506_s1 + $0x968] sm:$0xff] }
  0xc7   : > { %2688 = vmatpush1.bf16.msra.mxu1 %v4748_v20  ;;  %v4813_v20 = vcombine.high %v469_v12, %v473_v13  ;;  %v4812_v26 = vcombine.low %v469_v12, %v473_v13  ;;  %v398_v12 = vld [vmem:[%s7506_s1 + $0x710] sm:$0xff] }
  0xc8   : > { %2689 = vmatprep.subr.bf16.mxu1 %v4757_v53  ;;  %v477_v53 = vld [vmem:[%s7506_s1 + $0x988] sm:$0xff]  ;;  %v402_v13 = vld [vmem:[%s7506_s1 + $0x730] sm:$0xff] }
  0xc9   : > { %2770 = vmatpush1.bf16.msra.mxu0 %v4622_v22  ;;  %v4687_v22 = vcombine.high %v342_v14, %v346_v15  ;;  %v4734_v15 = vcombine.low %v390_v4, %v394_v5 }
  0xca   : > { %2771 = vmatprep.subr.bf16.mxu0 %v4631_v23  ;;  %v481_v23 = vld [vmem:[%s7506_s1 + $0x9a8] sm:$0xff] }
  0xcb   : > { %2690 = vmatpush1.bf16.msra.mxu1 %v4756_v28  ;;  %v4821_v28 = vcombine.high %v477_v53, %v481_v23  ;;  %v4820_v35 = vcombine.low %v477_v53, %v481_v23  ;;  %v406_v53 = vld [vmem:[%s7506_s1 + $0x750] sm:$0xff] }
  0xcc   : > { %2691 = vmatprep.subr.bf16.mxu1 %v4765_v30  ;;  %v485_v30 = vld [vmem:[%s7506_s1 + $0x9c8] sm:$0xff]  ;;  %v410_v23 = vld [vmem:[%s7506_s1 + $0x770] sm:$0xff] }
  0xcd   : > { %2772 = vmatpush1.bf16.msra.mxu0 %v4630_v29  ;;  %v4695_v29 = vcombine.high %v350_v24, %v354_v25  ;;  %v4742_v25 = vcombine.low %v398_v12, %v402_v13 }
  0xce   : > { %2773 = vmatprep.subr.bf16.mxu0 %v4639_v31  ;;  %v489_v31 = vld [vmem:[%s7506_s1 + $0x9e8] sm:$0xff] }
  0xcf   : > { %2692 = vmatpush1.bf16.msra.mxu1 %v4764_v37  ;;  %v4829_v37 = vcombine.high %v485_v30, %v489_v31  ;;  %v4828_v42 = vcombine.low %v485_v30, %v489_v31  ;;  %v414_v30 = vld [vmem:[%s7506_s1 + $0x790] sm:$0xff] }
  0xd0   : > { %2702 = vmatprep.subr.bf16.mxu1 %v4773_v19  ;;  %v493_v19 = vld [vmem:[%s7506_s1 + $0xa08] sm:$0xff]  ;;  %v418_v31 = vld [vmem:[%s7506_s1 + $0x7b0] sm:$0xff] }
  0xd1   : > { %2774 = vmatpush1.bf16.msra.mxu0 %v4638_v38  ;;  %v4703_v38 = vcombine.high %v358_v33, %v362_v34  ;;  %v4750_v34 = vcombine.low %v406_v53, %v410_v23 }
  0xd2   : > { %2784 = vmatprep.subr.bf16.mxu0 %v4647_v39  ;;  %2694 = vmatmul.mubr.bf16.vlgmr.msra.gmra.mrb[4].mxu1 %v5872_v21  ;;  %v497_v39 = vld [vmem:[%s7506_s1 + $0xa28] sm:$0xff] }
  0xd3   : > { %2703 = vmatpush1.bf16.msra.mxu1 %v4772_v44  ;;  %2734 = vmatprep.mubr.bf16.mxu1 %v5888_v27  ;;  %v4837_v44 = vcombine.high %v493_v19, %v497_v39  ;;  %v4836_v50 = vcombine.low %v493_v19, %v497_v39  ;;  %v422_v19 = vld [vmem:[%s7506_s1 + $0x7d0] sm:$0xff] }
  0xd4   : > { %2776 = vmatmul.mubr.bf16.vlgmr.msra.gmra.mrb[4].mxu0 %v5859_v16  ;;  %2704 = vmatprep.subr.bf16.mxu1 %v4781_v46  ;;  %v501_v46 = vld [vmem:[%s7506_s1 + $0xa48] sm:$0xff]  ;;  %v426_v39 = vld [vmem:[%s7506_s1 + $0x7f0] sm:$0xff] }
  0xd5   : > { %2785 = vmatpush1.bf16.msra.mxu0 %v4646_v45  ;;  %2816 = vmatprep.mubr.bf16.mxu0 %v5739_v61  ;;  %v4711_v45 = vcombine.high %v366_v40, %v370_v41  ;;  %v4758_v41 = vcombine.low %v414_v30, %v418_v31 }
  0xd6   : > { %2786 = vmatprep.subr.bf16.mxu0 %v4655_v47  ;;  %v505_v47 = vld [vmem:[%s7506_s1 + $0xa68] sm:$0xff] }
  0xd7   : > { %2705 = vmatpush1.bf16.msra.mxu1 %v4780_v52  ;;  %v4845_v52 = vcombine.high %v501_v46, %v505_v47  ;;  %v4844_v62 = vcombine.low %v501_v46, %v505_v47  ;;  %v430_v46 = vld [vmem:[%s7506_s1 + $0x810] sm:$0xff] }
  0xd8   : > { %2706 = vmatprep.subr.bf16.mxu1 %v4789_v56  ;;  %v509_v56 = vld [vmem:[%s7506_s1 + $0xa88] sm:$0xff]  ;;  %v434_v47 = vld [vmem:[%s7506_s1 + $0x830] sm:$0xff] }
  0xd9   : > { %2787 = vmatpush1.bf16.msra.mxu0 %v4654_v55  ;;  %v4719_v55 = vcombine.high %v374_v48, %v378_v49  ;;  %v4766_v49 = vcombine.low %v422_v19, %v426_v39 }
  0xda   : > { %2788 = vmatprep.subr.bf16.mxu0 %v4663_v57  ;;  %v513_v57 = vld [vmem:[%s7506_s1 + $0xaa8] sm:$0xff] }
  0xdb   : > { %2707 = vmatpush1.bf16.msra.mxu1 %v4788_v0  ;;  %v4853_v0 = vcombine.high %v509_v56, %v513_v57  ;;  %v4852_v6 = vcombine.low %v509_v56, %v513_v57  ;;  %v438_v56 = vld [vmem:[%s7506_s1 + $0x850] sm:$0xff] }
  0xdc   : > { %2708 = vmatprep.subr.bf16.mxu1 %v4797_v2  ;;  %v517_v2 = vld [vmem:[%s7506_s1 + $0xac8] sm:$0xff]  ;;  %v442_v57 = vld [vmem:[%s7506_s1 + $0x870] sm:$0xff] }
  0xdd   : > { %2789 = vmatpush1.bf16.msra.mxu0 %v4662_v1  ;;  %v4727_v1 = vcombine.high %v382_v59, %v386_v60  ;;  %v4774_v60 = vcombine.low %v430_v46, %v434_v47 }
  0xde   : > { %2790 = vmatprep.subr.bf16.mxu0 %v4671_v3  ;;  %v521_v3 = vld [vmem:[%s7506_s1 + $0xae8] sm:$0xff] }
  0xdf   : > { %2709 = vmatpush1.bf16.msra.mxu1 %v4796_v8  ;;  %v4861_v8 = vcombine.high %v517_v2, %v521_v3  ;;  %v4860_v14 = vcombine.low %v517_v2, %v521_v3  ;;  %v446_v2 = vld [vmem:[%s7506_s1 + $0x890] sm:$0xff] }
  0xe0   : > { %2710 = vmatprep.subr.bf16.mxu1 %v4805_v10  ;;  %v525_v10 = vld [vmem:[%s7506_s1 + $0xb08] sm:$0xff]  ;;  %v450_v3 = vld [vmem:[%s7506_s1 + $0x8b0] sm:$0xff] }
  0xe1   : > { %2791 = vmatpush1.bf16.msra.mxu0 %v4670_v9  ;;  %v4735_v9 = vcombine.high %v390_v4, %v394_v5  ;;  %v4782_v5 = vcombine.low %v438_v56, %v442_v57 }
  0xe2   : > { %2792 = vmatprep.subr.bf16.mxu0 %v4679_v11  ;;  %v529_v11 = vld [vmem:[%s7506_s1 + $0xb28] sm:$0xff] }
  0xe3   : > { %2711 = vmatpush1.bf16.msra.mxu1 %v4804_v17  ;;  %v4869_v17 = vcombine.high %v525_v10, %v529_v11  ;;  %v4868_v24 = vcombine.low %v525_v10, %v529_v11  ;;  %v454_v10 = vld [vmem:[%s7506_s1 + $0x8d0] sm:$0xff] }
  0xe4   : > { %2712 = vmatprep.subr.bf16.mxu1 %v4813_v20  ;;  %v533_v20 = vld [vmem:[%s7506_s1 + $0xb48] sm:$0xff]  ;;  %v458_v11 = vld [vmem:[%s7506_s1 + $0x8f0] sm:$0xff] }
  0xe5   : > { %2793 = vmatpush1.bf16.msra.mxu0 %v4678_v18  ;;  %v4743_v18 = vcombine.high %v398_v12, %v402_v13  ;;  %v4790_v13 = vcombine.low %v446_v2, %v450_v3 }
  0xe6   : > { %2794 = vmatprep.subr.bf16.mxu0 %v4687_v22  ;;  %v537_v22 = vld [vmem:[%s7506_s1 + $0xb68] sm:$0xff] }
  0xe7   : > { %2713 = vmatpush1.bf16.msra.mxu1 %v4812_v26  ;;  %v4877_v26 = vcombine.high %v533_v20, %v537_v22  ;;  %v4876_v33 = vcombine.low %v533_v20, %v537_v22  ;;  %v466_v20 = vld [vmem:[%s7506_s1 + $0x930] sm:$0xff] }
  0xe8   : > { %2714 = vmatprep.subr.bf16.mxu1 %v4821_v28  ;;  %v541_v28 = vld [vmem:[%s7506_s1 + $0xb88] sm:$0xff] }
  0xe9   : > { %2795 = vmatpush1.bf16.msra.mxu0 %v4686_v54  ;;  %v4751_v54 = vcombine.high %v406_v53, %v410_v23  ;;  %v4798_v53 = vcombine.low %v454_v10, %v458_v11 }
  0xea   : > { %2796 = vmatprep.subr.bf16.mxu0 %v4695_v29  ;;  %v545_v29 = vld [vmem:[%s7506_s1 + $0xba8] sm:$0xff] }
  0xeb   : > { %2715 = vmatpush1.bf16.msra.mxu1 %v4820_v35  ;;  %v4885_v35 = vcombine.high %v541_v28, %v545_v29  ;;  %v4884_v40 = vcombine.low %v541_v28, %v545_v29  ;;  %v474_v28 = vld [vmem:[%s7506_s1 + $0x970] sm:$0xff] }
  0xec   : > { %2716 = vmatprep.subr.bf16.mxu1 %v4829_v37  ;;  %v549_v37 = vld [vmem:[%s7506_s1 + $0xbc8] sm:$0xff] }
  0xed   : > { %2797 = vmatpush1.bf16.msra.mxu0 %v4694_v36  ;;  %v4759_v36 = vcombine.high %v414_v30, %v418_v31 }
  0xee   : > { %2798 = vmatprep.subr.bf16.mxu0 %v4703_v38  ;;  %v553_v38 = vld [vmem:[%s7506_s1 + $0xbe8] sm:$0xff] }
  0xef   : > { %2717 = vmatpush1.bf16.msra.mxu1 %v4828_v42  ;;  %v4893_v42 = vcombine.high %v549_v37, %v553_v38  ;;  %v4892_v48 = vcombine.low %v549_v37, %v553_v38  ;;  %v482_v37 = vld [vmem:[%s7506_s1 + $0x9b0] sm:$0xff] }
  0xf0   : > { %2718 = vmatprep.subr.bf16.mxu1 %v4837_v44  ;;  %v175_v44 = vld [vmem:[%s7506_s1 + $0x18] sm:$0xff] }
  0xf1   : > { %2799 = vmatpush1.bf16.msra.mxu0 %v4702_v43  ;;  %v4767_v43 = vcombine.high %v422_v19, %v426_v39 }
  0xf2   : > { %2800 = vmatprep.subr.bf16.mxu0 %v4711_v45  ;;  %v179_v45 = vld [vmem:[%s7506_s1 + $0x38] sm:$0xff] }
  0xf3   : > { %2719 = vmatpush1.bf16.msra.mxu1 %v4836_v50  ;;  %v4521_v50 = vcombine.high %v175_v44, %v179_v45  ;;  %v4520_v59 = vcombine.low %v175_v44, %v179_v45  ;;  %v486_v45 = vld [vmem:[%s7506_s1 + $0x9d0] sm:$0xff] }
  0xf4   : > { %2720 = vmatprep.subr.bf16.mxu1 %v4845_v52  ;;  %v183_v52 = vld [vmem:[%s7506_s1 + $0x58] sm:$0xff] }
  0xf5   : > { %2801 = vmatpush1.bf16.msra.mxu0 %v4710_v51  ;;  %v4775_v51 = vcombine.high %v430_v46, %v434_v47  ;;  %v490_v46 = vld [vmem:[%s7506_s1 + $0x9f0] sm:$0xff] }
  0xf6   : > { %2802 = vmatprep.subr.bf16.mxu0 %v4719_v55  ;;  %v187_v55 = vld [vmem:[%s7506_s1 + $0x78] sm:$0xff] }
  0xf7   : > { %2721 = vmatpush1.bf16.msra.mxu1 %v4844_v62  ;;  %v4529_v62 = vcombine.high %v183_v52, %v187_v55  ;;  %v4528_v4 = vcombine.low %v183_v52, %v187_v55  ;;  %v4831_v52 = vcombine.high %v486_v45, %v490_v46  ;;  %v239_v55 = vld [vmem:[%s7506_s1 + $0x218] sm:$0xff] }
  0xf8   : > { %2722 = vmatprep.subr.bf16.mxu1 %v4853_v0  ;;  %v191_v0 = vld [vmem:[%s7506_s1 + $0x98] sm:$0xff] }
  0xf9   : > { %2803 = vmatpush1.bf16.msra.mxu0 %v4718_v63  ;;  %v4783_v63 = vcombine.high %v438_v56, %v442_v57  ;;  %v243_v56 = vld [vmem:[%s7506_s1 + $0x238] sm:$0xff]  ;;  %v494_v57 = vld [vmem:[%s7506_s1 + $0xa10] sm:$0xff] }
  0xfa   : > { %2804 = vmatprep.subr.bf16.mxu0 %v4727_v1  ;;  %v195_v1 = vld [vmem:[%s7506_s1 + $0xb8] sm:$0xff] }
  0xfb   : > { %2723 = vmatpush1.bf16.msra.mxu1 %v4852_v6  ;;  %v4537_v6 = vcombine.high %v191_v0, %v195_v1  ;;  %v4536_v12 = vcombine.low %v191_v0, %v195_v1  ;;  %v247_v1 = vld [vmem:[%s7506_s1 + $0x258] sm:$0xff] }
  0xfc   : > { %2724 = vmatprep.subr.bf16.mxu1 %v4861_v8  ;;  %v199_v8 = vld [vmem:[%s7506_s1 + $0xd8] sm:$0xff] }
  0xfd   : > { %2805 = vmatpush1.bf16.msra.mxu0 %v4726_v7  ;;  %v4791_v7 = vcombine.high %v446_v2, %v450_v3  ;;  %v251_v2 = vld [vmem:[%s7506_s1 + $0x278] sm:$0xff]  ;;  %v502_v3 = vld [vmem:[%s7506_s1 + $0xa50] sm:$0xff] }
  0xfe   : > { %2806 = vmatprep.subr.bf16.mxu0 %v4735_v9  ;;  %v203_v9 = vld [vmem:[%s7506_s1 + $0xf8] sm:$0xff] }
  0xff   : > { %2725 = vmatpush1.bf16.msra.mxu1 %v4860_v14  ;;  %v4545_v14 = vcombine.high %v199_v8, %v203_v9  ;;  %v4544_v22 = vcombine.low %v199_v8, %v203_v9  ;;  %v255_v9 = vld [vmem:[%s7506_s1 + $0x298] sm:$0xff] }
 0x100   : > { %2726 = vmatprep.subr.bf16.mxu1 %v4869_v17  ;;  %v207_v17 = vld [vmem:[%s7506_s1 + $0x118] sm:$0xff] }
 0x101   : > { %2807 = vmatpush1.bf16.msra.mxu0 %v4734_v15  ;;  %v4799_v15 = vcombine.high %v454_v10, %v458_v11  ;;  %v259_v10 = vld [vmem:[%s7506_s1 + $0x2b8] sm:$0xff]  ;;  %v510_v11 = vld [vmem:[%s7506_s1 + $0xa90] sm:$0xff] }
 0x102   : > { %2808 = vmatprep.subr.bf16.mxu0 %v4743_v18  ;;  %v211_v18 = vld [vmem:[%s7506_s1 + $0x138] sm:$0xff] }
 0x103   : > { %2727 = vmatpush1.bf16.msra.mxu1 %v4868_v24  ;;  %v4553_v23 = vcombine.high %v207_v17, %v211_v18  ;;  %v4552_v29 = vcombine.low %v207_v17, %v211_v18  ;;  %v263_v18 = vld [vmem:[%s7506_s1 + $0x2d8] sm:$0xff] }
 0x104   : > { %2728 = vmatprep.subr.bf16.mxu1 %v4877_v26  ;;  %v219_v26 = vld [vmem:[%s7506_s1 + $0x178] sm:$0xff] }
 0x105   : > { %2809 = vmatpush1.bf16.msra.mxu0 %v4742_v25  ;;  %v215_v25 = vld [vmem:[%s7506_s1 + $0x158] sm:$0xff] }
 0x106   : > { %2810 = vmatprep.subr.bf16.mxu0 %v4751_v54  ;;  %v470_v54 = vld [vmem:[%s7506_s1 + $0x950] sm:$0xff]  ;;  %v4561_v31 = vcombine.high %v215_v25, %v219_v26  ;;  %v4560_v38 = vcombine.low %v215_v25, %v219_v26  ;;  %v271_v26 = vld [vmem:[%s7506_s1 + $0x318] sm:$0xff] }
 0x107   : > { %2729 = vmatpush1.bf16.msra.mxu1 %v4876_v33  ;;  %v4815_v33 = vcombine.high %v470_v54, %v474_v28  ;;  %v4814_v19 = vcombine.low %v470_v54, %v474_v28  ;;  %v275_v54 = vld [vmem:[%s7506_s1 + $0x338] sm:$0xff]  ;;  %v526_v28 = vld [vmem:[%s7506_s1 + $0xb10] sm:$0xff] }
 0x108   : > { %2730 = vmatprep.subr.bf16.mxu1 %v4885_v35  ;;  %v227_v35 = vld [vmem:[%s7506_s1 + $0x1b8] sm:$0xff] }
 0x109   : > { %2811 = vmatpush1.bf16.msra.mxu0 %v4750_v34  ;;  %v223_v34 = vld [vmem:[%s7506_s1 + $0x198] sm:$0xff] }
 0x10a   : > { %2812 = vmatprep.subr.bf16.mxu0 %v4759_v36  ;;  %v478_v36 = vld [vmem:[%s7506_s1 + $0x990] sm:$0xff]  ;;  %v4569_v39 = vcombine.high %v223_v34, %v227_v35 }
 0x10b   : > { %2731 = vmatpush1.bf16.msra.mxu1 %v4884_v40 }
 0x10c   : > { %2732 = vmatprep.subr.bf16.mxu1 %v4893_v42  ;;  %v231_v42 = vld [vmem:[%s7506_s1 + $0x1d8] sm:$0xff] }
 0x10d   : > { %2813 = vmatpush1.bf16.msra.mxu0 %v4758_v41  ;;  %v4823_v41 = vcombine.high %v478_v36, %v482_v37 }
 0x10e   : > { %2814 = vmatprep.subr.bf16.mxu0 %v4767_v43  ;;  %v235_v43 = vld [vmem:[%s7506_s1 + $0x1f8] sm:$0xff] }
 0x10f   : > { %2733 = vmatpush1.bf16.msra.mxu1 %v4892_v48  ;;  %v4568_v48 = vcombine.low %v223_v34, %v227_v35  ;;  %v279_v35 = vld [vmem:[%s7506_s1 + $0x358] sm:$0xff] }
 0x110   : > { %2866 = vmatprep.subr.bf16.mxu1 %v4521_v50  ;;  %v4822_v50 = vcombine.low %v478_v36, %v482_v37  ;;  %v283_v36 = vld [vmem:[%s7506_s1 + $0x378] sm:$0xff]  ;;  %v534_v37 = vld [vmem:[%s7506_s1 + $0xb50] sm:$0xff] }
 0x111   : > { %2815 = vmatpush1.bf16.msra.mxu0 %v4766_v49 }
 0x112   : > { %2825 = vmatprep.subr.bf16.mxu0 %v4775_v51  ;;  %2735 = vmatmul.mubr.bf16.vlgmr.msra.gmra.mrb[4].mxu1 %v6076_v32  ;;  %v4577_v51 = vcombine.high %v231_v42, %v235_v43 }
 0x113   : > { %2867 = vmatpush1.bf16.msra.mxu1 %v4520_v59  ;;  %2898 = vmatprep.mubr.bf16.mxu1 %v5729_v58  ;;  %v462_v58 = vld [vmem:[%s7506_s1 + $0x910] sm:$0xff] }
 0x114   : > { %2817 = vmatmul.mubr.bf16.vlgmr.msra.gmra.mrb[4].mxu0 %v5872_v21  ;;  %2868 = vmatprep.subr.bf16.mxu1 %v4529_v62  ;;  %v4807_v24 = vcombine.high %v462_v58, %v466_v20  ;;  %v4806_v30 = vcombine.low %v462_v58, %v466_v20  ;;  %v498_v59 = vld [vmem:[%s7506_s1 + $0xa30] sm:$0xff]  ;;  %v4830_v62 = vcombine.low %v486_v45, %v490_v46  ;;  %v267_v58 = vld [vmem:[%s7506_s1 + $0x2f8] sm:$0xff] }
 0x115   : > { %2826 = vmatpush1.bf16.msra.mxu0 %v4774_v60  ;;  %2857 = vmatprep.mubr.bf16.mxu0 %v5888_v27  ;;  %v4576_v60 = vcombine.low %v231_v42, %v235_v43  ;;  %v4839_v0 = vcombine.high %v494_v57, %v498_v59  ;;  %v518_v20 = vld [vmem:[%s7506_s1 + $0xad0] sm:$0xff]  ;;  %v287_v43 = vld [vmem:[%s7506_s1 + $0x398] sm:$0xff] }
 0x116   : > { %2827 = vmatprep.subr.bf16.mxu0 %v4783_v63  ;;  %v4585_v63 = vcombine.high %v239_v55, %v243_v56  ;;  %v291_v45 = vld [vmem:[%s7506_s1 + $0x3b8] sm:$0xff]  ;;  %v542_v46 = vld [vmem:[%s7506_s1 + $0xb90] sm:$0xff] }
 0x117   : > { %2869 = vmatpush1.bf16.msra.mxu1 %v4528_v4  ;;  %v506_v4 = vld [vmem:[%s7506_s1 + $0xa70] sm:$0xff] }
 0x118   : > { %2870 = vmatprep.subr.bf16.mxu1 %v4537_v6  ;;  %v4838_v6 = vcombine.low %v494_v57, %v498_v59  ;;  %v4847_v8 = vcombine.high %v502_v3, %v506_v4  ;;  %v554_v57 = vld [vmem:[%s7506_s1 + $0xbf0] sm:$0xff]  ;;  %v4632_v59 = vcombine.low %v287_v43, %v291_v45 }
 0x119   : > { %2828 = vmatpush1.bf16.msra.mxu0 %v4782_v5  ;;  %v4584_v5 = vcombine.low %v239_v55, %v243_v56  ;;  %v299_v55 = vld [vmem:[%s7506_s1 + $0x3f8] sm:$0xff]  ;;  %v550_v56 = vld [vmem:[%s7506_s1 + $0xbd0] sm:$0xff] }
 0x11a   : > { %2829 = vmatprep.subr.bf16.mxu0 %v4791_v7  ;;  %v4593_v7 = vcombine.high %v247_v1, %v251_v2 }
 0x11b   : > { %2871 = vmatpush1.bf16.msra.mxu1 %v4536_v12  ;;  %v514_v12 = vld [vmem:[%s7506_s1 + $0xab0] sm:$0xff] }
 0x11c   : > { %2872 = vmatprep.subr.bf16.mxu1 %v4545_v14  ;;  %v4846_v14 = vcombine.low %v502_v3, %v506_v4  ;;  %v4855_v17 = vcombine.high %v510_v11, %v514_v12  ;;  %v4894_v3 = vcombine.low %v550_v56, %v554_v57 }
 0x11d   : > { %2830 = vmatpush1.bf16.msra.mxu0 %v4790_v13  ;;  %v4592_v13 = vcombine.low %v247_v1, %v251_v2  ;;  %v307_v1 = vld [vmem:[%s7506_s1 + $0x438] sm:$0xff] }
 0x11e   : > { %2831 = vmatprep.subr.bf16.mxu0 %v4799_v15  ;;  %v4601_v15 = vcombine.high %v255_v9, %v259_v10 }
 0x11f   : > { %2873 = vmatpush1.bf16.msra.mxu1 %v4544_v22  ;;  %v522_v22 = vld [vmem:[%s7506_s1 + $0xaf0] sm:$0xff] }
 0x120   : > { %2874 = vmatprep.subr.bf16.mxu1 %v4553_v23  ;;  %v4854_v23 = vcombine.low %v510_v11, %v514_v12  ;;  %v4863_v25 = vcombine.high %v518_v20, %v522_v22 }
 0x121   : > { %2832 = vmatpush1.bf16.msra.mxu0 %v4798_v53  ;;  %v4600_v53 = vcombine.low %v255_v9, %v259_v10  ;;  %v319_v9 = vld [vmem:[%s7506_s1 + $0x498] sm:$0xff] }
 0x122   : > { %2833 = vmatprep.subr.bf16.mxu0 %v4807_v24  ;;  %v4609_v24 = vcombine.high %v263_v18, %v267_v58  ;;  %v323_v10 = vld [vmem:[%s7506_s1 + $0x4b8] sm:$0xff] }
 0x123   : > { %2875 = vmatpush1.bf16.msra.mxu1 %v4552_v29  ;;  %v530_v29 = vld [vmem:[%s7506_s1 + $0xb30] sm:$0xff]  ;;  %v4665_v12 = vcombine.high %v319_v9, %v323_v10 }
 0x124   : > { %2876 = vmatprep.subr.bf16.mxu1 %v4561_v31  ;;  %v4862_v31 = vcombine.low %v518_v20, %v522_v22  ;;  %v4871_v34 = vcombine.high %v526_v28, %v530_v29  ;;  %v343_v20 = vld [vmem:[%s7506_s1 + $0x558] sm:$0xff] }
 0x125   : > { %2834 = vmatpush1.bf16.msra.mxu0 %v4806_v30  ;;  %v6534_v40 = vpop.f32.mrb[0].mxu1  ;;  %v4608_v30 = vcombine.low %v263_v18, %v267_v58  ;;  %v347_v22 = vld [vmem:[%s7506_s1 + $0x578] sm:$0xff] }
 0x126   : > { %2835 = vmatprep.subr.bf16.mxu0 %v4815_v33  ;;  %v6542_v44 = vpop.f32.mrb[1].mxu1  ;;  %v4617_v33 = vcombine.high %v271_v26, %v275_v54 }
 0x127   : > { %v2535_v47 = vpop.f32.mrb[2].mxu1  ;;  %2877 = vmatpush1.bf16.msra.mxu1 %v4560_v38  ;;  %v538_v38 = vld [vmem:[%s7506_s1 + $0xb70] sm:$0xff] }
 0x128   : > { %v2536_v49 = vpop.f32.mrb[3].mxu1  ;;  %2878 = vmatprep.subr.bf16.mxu1 %v4569_v39  ;;  %v4870_v39 = vcombine.low %v526_v28, %v530_v29  ;;  %v4879_v42 = vcombine.high %v534_v37, %v538_v38  ;;  %v546_v47 = vld [vmem:[%s7506_s1 + $0xbb0] sm:$0xff]  ;;  %v359_v28 = vld [vmem:[%s7506_s1 + $0x5d8] sm:$0xff] }
 0x129   : > { %2836 = vmatpush1.bf16.msra.mxu0 %v4814_v19  ;;  %v4616_v19 = vcombine.low %v271_v26, %v275_v54  ;;  %v4878_v49 = vcombine.low %v534_v37, %v538_v38  ;;  %v4688_v26 = vcombine.low %v343_v20, %v347_v22  ;;  %v363_v29 = vld [vmem:[%s7506_s1 + $0x5f8] sm:$0xff] }
 0x12a   : > { %2837 = vmatprep.subr.bf16.mxu0 %v4823_v41  ;;  %v4625_v41 = vcombine.high %v279_v35, %v283_v36  ;;  %v4705_v37 = vcombine.high %v359_v28, %v363_v29 }
 0x12b   : > { %2879 = vmatpush1.bf16.msra.mxu1 %v4568_v48  ;;  %v4624_v48 = vcombine.low %v279_v35, %v283_v36 }
 0x12c   : > { %2880 = vmatprep.subr.bf16.mxu1 %v4577_v51  ;;  %v4887_v51 = vcombine.high %v542_v46, %v546_v47 }
 0x12d   : > { %2838 = vmatpush1.bf16.msra.mxu0 %v4822_v50  ;;  %v4633_v50 = vcombine.high %v287_v43, %v291_v45  ;;  %v375_v43 = vld [vmem:[%s7506_s1 + $0x658] sm:$0xff] }
 0x12e   : > { %2839 = vmatprep.subr.bf16.mxu0 %v4831_v52  ;;  %v295_v52 = vld [vmem:[%s7506_s1 + $0x3d8] sm:$0xff] }
 0x12f   : > { %2881 = vmatpush1.bf16.msra.mxu1 %v4576_v60  ;;  %v4886_v60 = vcombine.low %v542_v46, %v546_v47  ;;  %v4640_v2 = vcombine.low %v295_v52, %v299_v55  ;;  %v379_v45 = vld [vmem:[%s7506_s1 + $0x678] sm:$0xff]  ;;  %v5195_v47 = vld [vmem:[%s7507_s2 + $0x34] ss:$24 sps:$4 sm:$0xff]  }
 0x130   : > { %2882 = vmatprep.subr.bf16.mxu1 %v4585_v63  ;;  %v4895_v63 = vcombine.high %v550_v56, %v554_v57  ;;  %v5199_v57 = vld [vmem:[%s7507_s2 + $0x60] ss:$24 sps:$4 sm:$0xff]  }
 0x131   : > { %2840 = vmatpush1.bf16.msra.mxu0 %v4830_v62  ;;  %v4641_v62 = vcombine.high %v295_v52, %v299_v55  ;;  %v4720_v52 = vcombine.low %v375_v43, %v379_v45  ;;  %v5201_v55 = vld [vmem:[%s7507_s2 + $0x64] ss:$24 sps:$4 sm:$0xff]  }
 0x132   : > { %2841 = vmatprep.subr.bf16.mxu0 %v4839_v0  ;;  %v303_v0 = vld [vmem:[%s7506_s1 + $0x418] sm:$0xff] }
 0x133   : > { %2883 = vmatpush1.bf16.msra.mxu1 %v4584_v5  ;;  %v4649_v4 = vcombine.high %v303_v0, %v307_v1  ;;  %v311_v5 = vld [vmem:[%s7506_s1 + $0x458] sm:$0xff] }
 0x134   : > { %2884 = vmatprep.subr.bf16.mxu1 %v4593_v7  ;;  %v4648_v7 = vcombine.low %v303_v0, %v307_v1  ;;  %v5205_v1 = vld [vmem:[%s7507_s2 + $0x90] ss:$24 sps:$4 sm:$0xff]  }
 0x135   : > { %2842 = vmatpush1.bf16.msra.mxu0 %v4838_v6  ;;  %v315_v6 = vld [vmem:[%s7506_s1 + $0x478] sm:$0xff] }
 0x136   : > { %2843 = vmatprep.subr.bf16.mxu0 %v4847_v8  ;;  %v4657_v8 = vcombine.high %v311_v5, %v315_v6  ;;  %v4656_v11 = vcombine.low %v311_v5, %v315_v6  ;;  %v5213_v5 = vld [vmem:[%s7507_s2 + $0xc4] ss:$24 sps:$4 sm:$0xff]  }
 0x137   : > { %2885 = vmatpush1.bf16.msra.mxu1 %v4592_v13  ;;  %v327_v13 = vld [vmem:[%s7506_s1 + $0x4d8] sm:$0xff] }
 0x138   : > { %2886 = vmatprep.subr.bf16.mxu1 %v4601_v15  ;;  %v4664_v15 = vcombine.low %v319_v9, %v323_v10  ;;  %v411_v9 = vld [vmem:[%s7506_s1 + $0x778] sm:$0xff] }
 0x139   : > { %2844 = vmatpush1.bf16.msra.mxu0 %v4846_v14  ;;  %v331_v14 = vld [vmem:[%s7506_s1 + $0x4f8] sm:$0xff] }
 0x13a   : > { %2845 = vmatprep.subr.bf16.mxu0 %v4855_v17  ;;  %v335_v17 = vld [vmem:[%s7506_s1 + $0x518] sm:$0xff]  ;;  %v4672_v18 = vcombine.low %v327_v13, %v331_v14 }
 0x13b   : > { %2887 = vmatpush1.bf16.msra.mxu1 %v4600_v53 }
 0x13c   : > { %2888 = vmatprep.subr.bf16.mxu1 %v4609_v24  ;;  %v351_v24 = vld [vmem:[%s7506_s1 + $0x598] sm:$0xff] }
 0x13d   : > { %2846 = vmatpush1.bf16.msra.mxu0 %v4854_v23  ;;  %v4689_v23 = vcombine.high %v343_v20, %v347_v22  ;;  %v423_v20 = vld [vmem:[%s7506_s1 + $0x7d8] sm:$0xff] }
 0x13e   : > { %2847 = vmatprep.subr.bf16.mxu0 %v4863_v25  ;;  %v355_v25 = vld [vmem:[%s7506_s1 + $0x5b8] sm:$0xff] }
 0x13f   : > { %2889 = vmatpush1.bf16.msra.mxu1 %v4608_v30  ;;  %v4697_v54 = vcombine.high %v351_v24, %v355_v25  ;;  %v427_v22 = vld [vmem:[%s7506_s1 + $0x7f8] sm:$0xff] }
 0x140   : > { %2890 = vmatprep.subr.bf16.mxu1 %v4617_v33 }
 0x141   : > { %2848 = vmatpush1.bf16.msra.mxu0 %v4862_v31 }
 0x142   : > { %2849 = vmatprep.subr.bf16.mxu0 %v4871_v34  ;;  %v4696_v34 = vcombine.low %v351_v24, %v355_v25  ;;  %v5237_v24 = vld [vmem:[%s7507_s2 + $0x184] ss:$24 sps:$4 sm:$0xff]   ;;  %v4769_v25 = vcombine.high %v423_v20, %v427_v22 }
 0x143   : > { %2891 = vmatpush1.bf16.msra.mxu1 %v4616_v19  ;;  %v367_v19 = vld [vmem:[%s7506_s1 + $0x618] sm:$0xff] }
 0x144   : > { %2892 = vmatprep.subr.bf16.mxu1 %v4625_v41  ;;  %v5189_v41 = vld [vmem:[%s7507_s2 + $0x4] ss:$24 sps:$4 sm:$0xff]  }
 0x145   : > { %2850 = vmatpush1.bf16.msra.mxu0 %v4870_v39  ;;  %v371_v39 = vld [vmem:[%s7506_s1 + $0x638] sm:$0xff] }
 0x146   : > { %2851 = vmatprep.subr.bf16.mxu0 %v4879_v42  ;;  %v5187_v42 = vld [vmem:[%s7507_s2] ss:$24 sps:$4 sm:$0xff]   ;;  %v4712_v46 = vcombine.low %v367_v19, %v371_v39 }
 0x147   : > { %2893 = vmatpush1.bf16.msra.mxu1 %v4624_v48  ;;  %v4721_v48 = vcombine.high %v375_v43, %v379_v45  ;;  %v5255_v43 = vld [vmem:[%s7507_s2 + $0x214] ss:$24 sps:$4 sm:$0xff]  }
 0x148   : > { %2894 = vmatprep.subr.bf16.mxu1 %v4633_v50  ;;  %v383_v50 = vld [vmem:[%s7506_s1 + $0x698] sm:$0xff] }
 0x149   : > { %2852 = vmatpush1.bf16.msra.mxu0 %v4878_v49  ;;  %v5193_v49 = vld [vmem:[%s7507_s2 + $0x30] ss:$24 sps:$4 sm:$0xff]  }
 0x14a   : > { %2853 = vmatprep.subr.bf16.mxu0 %v4887_v51  ;;  %v387_v51 = vld [vmem:[%s7506_s1 + $0x6b8] sm:$0xff] }
 0x14b   : > { %2895 = vmatpush1.bf16.msra.mxu1 %v4632_v59  ;;  %v4729_v56 = vcombine.high %v383_v50, %v387_v51  ;;  %v391_v59 = vld [vmem:[%s7506_s1 + $0x6d8] sm:$0xff] }
 0x14c   : > { %2896 = vmatprep.subr.bf16.mxu1 %v4641_v62  ;;  %v4728_v62 = vcombine.low %v383_v50, %v387_v51  ;;  %v463_v50 = vld [vmem:[%s7506_s1 + $0x918] sm:$0xff] }
 0x14d   : > { %2854 = vmatpush1.bf16.msra.mxu0 %v4886_v60  ;;  %v395_v60 = vld [vmem:[%s7506_s1 + $0x6f8] sm:$0xff] }
 0x14e   : > { %2855 = vmatprep.subr.bf16.mxu0 %v4895_v63  ;;  %v5207_v63 = vld [vmem:[%s7507_s2 + $0x94] ss:$24 sps:$4 sm:$0xff]   ;;  %v4737_v0 = vcombine.high %v391_v59, %v395_v60  ;;  %v467_v51 = vld [vmem:[%s7506_s1 + $0x938] sm:$0xff] }
 0x14f   : > { %2897 = vmatpush1.bf16.msra.mxu1 %v4640_v2  ;;  %v399_v2 = vld [vmem:[%s7506_s1 + $0x718] sm:$0xff] }
 0x150   : > { %2907 = vmatprep.subr.bf16.mxu1 %v4649_v4  ;;  %v4736_v4 = vcombine.low %v391_v59, %v395_v60  ;;  %v471_v59 = vld [vmem:[%s7506_s1 + $0x958] sm:$0xff] }
 0x151   : > { %2856 = vmatpush1.bf16.msra.mxu0 %v4894_v3  ;;  %v403_v3 = vld [vmem:[%s7506_s1 + $0x738] sm:$0xff] }
 0x152   : > { %2899 = vmatmul.mubr.bf16.vlgmr.msra.gmra.mrb[8].mxu1 %v5859_v16  ;;  %v4673_v16 = vcombine.high %v327_v13, %v331_v14  ;;  %4177 = vmatprep.subr.bf16.mxu0 %v5189_v41  ;;  %v4745_v6 = vcombine.high %v399_v2, %v403_v3  ;;  %v4744_v10 = vcombine.low %v399_v2, %v403_v3  ;;  %v5217_v13 = vld [vmem:[%s7507_s2 + $0xf0] ss:$24 sps:$4 sm:$0xff]   ;;  %v415_v14 = vld [vmem:[%s7506_s1 + $0x798] sm:$0xff] }
 0x153   : > { %2908 = vmatpush1.bf16.msra.mxu1 %v4648_v7  ;;  %2939 = vmatprep.mubr.bf16.mxu1 %v5739_v61  ;;  %v339_v61 = vld [vmem:[%s7506_s1 + $0x538] sm:$0xff] }
 0x154   : > { %2858 = vmatmul.mubr.bf16.vlgmr.msra.gmra.mrb[4].mxu0 %v6076_v32  ;;  %2909 = vmatprep.subr.bf16.mxu1 %v4657_v8  ;;  %v4681_v58 = vcombine.high %v335_v17, %v339_v61  ;;  %v4680_v53 = vcombine.low %v335_v17, %v339_v61  ;;  %v5211_v7 = vld [vmem:[%s7507_s2 + $0xc0] ss:$24 sps:$4 sm:$0xff]  }
 0x155   : > { %4178 = vmatpush1.bf16.msra.mxu0 %v5187_v42  ;;  %v407_v8 = vld [vmem:[%s7506_s1 + $0x758] sm:$0xff] }
 0x156   : > { %4179 = vmatprep.subr.bf16.mxu0 %v5195_v47  ;;  %v5223_v17 = vld [vmem:[%s7507_s2 + $0x120] ss:$24 sps:$4 sm:$0xff]   ;;  %v4752_v61 = vcombine.low %v407_v8, %v411_v9 }
 0x157   : > { %2910 = vmatpush1.bf16.msra.mxu1 %v4656_v11  ;;  %v5219_v11 = vld [vmem:[%s7507_s2 + $0xf4] ss:$24 sps:$4 sm:$0xff]   ;;  %v451_v41 = vld [vmem:[%s7506_s1 + $0x8b8] sm:$0xff] }
 0x158   : > { %2911 = vmatprep.subr.bf16.mxu1 %v4665_v12  ;;  %v4753_v12 = vcombine.high %v407_v8, %v411_v9  ;;  %v475_v60 = vld [vmem:[%s7506_s1 + $0x978] sm:$0xff] }
 0x159   : > { %4180 = vmatpush1.bf16.msra.mxu0 %v5193_v49  ;;  %v479_v2 = vld [vmem:[%s7506_s1 + $0x998] sm:$0xff] }
 0x15a   : > { %4181 = vmatprep.subr.bf16.mxu0 %v5201_v55  ;;  %v483_v3 = vld [vmem:[%s7506_s1 + $0x9b8] sm:$0xff] }
 0x15b   : > { %2912 = vmatpush1.bf16.msra.mxu1 %v4664_v15  ;;  %v419_v15 = vld [vmem:[%s7506_s1 + $0x7b8] sm:$0xff]  ;;  %v4824_v9 = vcombine.low %v479_v2, %v483_v3 }
 0x15c   : > { %2913 = vmatprep.subr.bf16.mxu1 %v4673_v16  ;;  %v5225_v16 = vld [vmem:[%s7507_s2 + $0x124] ss:$24 sps:$4 sm:$0xff]  }
 0x15d   : > { %4182 = vmatpush1.bf16.msra.mxu0 %v5199_v57  ;;  %v4809_v57 = vcombine.high %v463_v50, %v467_v51  ;;  %v491_v8 = vld [vmem:[%s7506_s1 + $0x9f8] sm:$0xff] }
 0x15e   : > { %4183 = vmatprep.subr.bf16.mxu0 %v5207_v63  ;;  %v4808_v63 = vcombine.low %v463_v50, %v467_v51  ;;  %v5204_v50 = vld [vmem:[%s7507_s2 + $0x6c] ss:$24 sps:$4 sm:$0xff]   ;;  %v5202_v51 = vld [vmem:[%s7507_s2 + $0x68] ss:$24 sps:$4 sm:$0xff]  }
 0x15f   : > { %2914 = vmatpush1.bf16.msra.mxu1 %v4672_v18  ;;  %v5231_v18 = vld [vmem:[%s7507_s2 + $0x154] ss:$24 sps:$4 sm:$0xff]  }
 0x160   : > { %2915 = vmatprep.subr.bf16.mxu1 %v4681_v58  ;;  %v4761_v58 = vcombine.high %v415_v14, %v419_v15 }
 0x161   : > { %4184 = vmatpush1.bf16.msra.mxu0 %v5205_v1  ;;  %v4817_v1 = vcombine.high %v471_v59, %v475_v60 }
 0x162   : > { %4185 = vmatprep.subr.bf16.mxu0 %v5213_v5  ;;  %v4816_v5 = vcombine.low %v471_v59, %v475_v60  ;;  %v5220_v59 = vld [vmem:[%s7507_s2 + $0xf8] ss:$24 sps:$4 sm:$0xff]   ;;  %v5228_v60 = vld [vmem:[%s7507_s2 + $0x12c] ss:$24 sps:$4 sm:$0xff]  }
 0x163   : > { %2916 = vmatpush1.bf16.msra.mxu1 %v4680_v53  ;;  %v5229_v53 = vld [vmem:[%s7507_s2 + $0x150] ss:$24 sps:$4 sm:$0xff]  }
 0x164   : > { %2917 = vmatprep.subr.bf16.mxu1 %v4689_v23  ;;  %v4760_v23 = vcombine.low %v415_v14, %v419_v15  ;;  %v499_v14 = vld [vmem:[%s7506_s1 + $0xa38] sm:$0xff] }
 0x165   : > { %4186 = vmatpush1.bf16.msra.mxu0 %v5211_v7  ;;  %v487_v7 = vld [vmem:[%s7506_s1 + $0x9d8] sm:$0xff] }
 0x166   : > { %4187 = vmatprep.subr.bf16.mxu0 %v5219_v11  ;;  %v4833_v11 = vcombine.high %v487_v7, %v491_v8  ;;  %v4832_v15 = vcombine.low %v487_v7, %v491_v8  ;;  %v5246_v7 = vld [vmem:[%s7507_s2 + $0x1bc] ss:$24 sps:$4 sm:$0xff]   ;;  %v5244_v8 = vld [vmem:[%s7507_s2 + $0x1b8] ss:$24 sps:$4 sm:$0xff]  }
 0x167   : > { %v2613_v30 = vpop.f32.mrb[0].mxu0  ;;  %2918 = vmatpush1.bf16.msra.mxu1 %v4688_v26  ;;  %v431_v26 = vld [vmem:[%s7506_s1 + $0x818] sm:$0xff] }
 0x168   : > { %v6698_v31 = vadd.f32 %v2613_v30, %v6534_v40  ;;  %v2615_v33 = vpop.f32.mrb[1].mxu0  ;;  %2919 = vmatprep.subr.bf16.mxu1 %v4697_v54  ;;  %v4704_v40 = vcombine.low %v359_v28, %v363_v29  ;;  %v435_v54 = vld [vmem:[%s7506_s1 + $0x838] sm:$0xff]  ;;  %v4768_v29 = vcombine.low %v423_v20, %v427_v22  ;;  %v5243_v30 = vld [vmem:[%s7507_s2 + $0x1b4] ss:$24 sps:$4 sm:$0xff]  }
 0x169   : > { %v6701_v35 = vadd.f32 %v2615_v33, %v6542_v44  ;;  %v2617_v36 = vpop.f32.mrb[2].mxu0  ;;  %v4713_v44 = vcombine.high %v367_v19, %v371_v39  ;;  %4188 = vmatpush1.bf16.msra.mxu0 %v5217_v13  ;;  %v5235_v28 = vld [vmem:[%s7507_s2 + $0x180] ss:$24 sps:$4 sm:$0xff]   ;;  %v4777_v33 = vcombine.high %v431_v26, %v435_v54  ;;  %v5249_v39 = vld [vmem:[%s7507_s2 + $0x1e4] ss:$24 sps:$4 sm:$0xff]  }
 0x16a   : > { %v2618_v38 = vpop.f32.mrb[3].mxu0  ;;  %4189 = vmatprep.subr.bf16.mxu0 %v5225_v16  ;;  %v443_v36 = vld [vmem:[%s7506_s1 + $0x878] sm:$0xff] }
 0x16b   : > { %2920 = vmatpush1.bf16.msra.mxu1 %v4696_v34  ;;  %v439_v34 = vld [vmem:[%s7506_s1 + $0x858] sm:$0xff]  ;;  %v4776_v38 = vcombine.low %v431_v26, %v435_v54 }
 0x16c   : > { %2921 = vmatprep.subr.bf16.mxu1 %v4705_v37  ;;  %v5241_v37 = vld [vmem:[%s7507_s2 + $0x1b0] ss:$24 sps:$4 sm:$0xff]   ;;  %v4785_v19 = vcombine.high %v439_v34, %v443_v36  ;;  %v4784_v42 = vcombine.low %v439_v34, %v443_v36  ;;  %v495_v13 = vld [vmem:[%s7506_s1 + $0xa18] sm:$0xff] }
 0x16d   : > { %4190 = vmatpush1.bf16.msra.mxu0 %v5223_v17  ;;  %v4841_v16 = vcombine.high %v495_v13, %v499_v14  ;;  %v503_v17 = vld [vmem:[%s7506_s1 + $0xa58] sm:$0xff] }
 0x16e   : > { %4191 = vmatprep.subr.bf16.mxu0 %v5231_v18  ;;  %v5285_v18 = vld [vmem:[%s7507_s2 + $0x304] ss:$24 sps:$4 sm:$0xff]  }
 0x16f   : > { %2922 = vmatpush1.bf16.msra.mxu1 %v4704_v40  ;;  %v447_v40 = vld [vmem:[%s7506_s1 + $0x898] sm:$0xff] }
 0x170   : > { %2923 = vmatprep.subr.bf16.mxu1 %v4713_v44  ;;  %v5247_v44 = vld [vmem:[%s7507_s2 + $0x1e0] ss:$24 sps:$4 sm:$0xff]   ;;  %v4793_v45 = vcombine.high %v447_v40, %v451_v41  ;;  %v4792_v47 = vcombine.low %v447_v40, %v451_v41 }
 0x171   : > { %4192 = vmatpush1.bf16.msra.mxu0 %v5229_v53  ;;  %v511_v22 = vld [vmem:[%s7506_s1 + $0xa98] sm:$0xff] }
 0x172   : > { %4193 = vmatprep.subr.bf16.mxu0 %v5237_v24  ;;  %v515_v53 = vld [vmem:[%s7506_s1 + $0xab8] sm:$0xff] }
 0x173   : > { %2924 = vmatpush1.bf16.msra.mxu1 %v4712_v46  ;;  %v459_v46 = vld [vmem:[%s7506_s1 + $0x8f8] sm:$0xff]  ;;  %v4857_v24 = vcombine.high %v511_v22, %v515_v53  ;;  %v4856_v54 = vcombine.low %v511_v22, %v515_v53  ;;  %v5288_v53 = vld [vmem:[%s7507_s2 + $0x30c] ss:$24 sps:$4 sm:$0xff]  }
 0x174   : > { %2925 = vmatprep.subr.bf16.mxu1 %v4721_v48  ;;  %v5261_v48 = vld [vmem:[%s7507_s2 + $0x244] ss:$24 sps:$4 sm:$0xff]   ;;  %v5280_v22 = vld [vmem:[%s7507_s2 + $0x2d8] ss:$24 sps:$4 sm:$0xff]  }
 0x175   : > { %4194 = vmatpush1.bf16.msra.mxu0 %v5235_v28  ;;  %v523_v26 = vld [vmem:[%s7506_s1 + $0xaf8] sm:$0xff] }
 0x176   : > { %4195 = vmatprep.subr.bf16.mxu0 %v5243_v30  ;;  %v531_v30 = vld [vmem:[%s7506_s1 + $0xb38] sm:$0xff] }
 0x177   : > { %2926 = vmatpush1.bf16.msra.mxu1 %v4720_v52  ;;  %v5259_v52 = vld [vmem:[%s7507_s2 + $0x240] ss:$24 sps:$4 sm:$0xff]  }
 0x178   : > { %2927 = vmatprep.subr.bf16.mxu1 %v4729_v56  ;;  %v5267_v56 = vld [vmem:[%s7507_s2 + $0x274] ss:$24 sps:$4 sm:$0xff]   ;;  %v535_v36 = vld [vmem:[%s7506_s1 + $0xb58] sm:$0xff] }
 0x179   : > { %4196 = vmatpush1.bf16.msra.mxu0 %v5241_v37  ;;  %v539_v37 = vld [vmem:[%s7506_s1 + $0xb78] sm:$0xff] }
 0x17a   : > { %4197 = vmatprep.subr.bf16.mxu0 %v5249_v39  ;;  %v543_v39 = vld [vmem:[%s7506_s1 + $0xb98] sm:$0xff]  ;;  %v4880_v41 = vcombine.low %v535_v36, %v539_v37 }
 0x17b   : > { %2928 = vmatpush1.bf16.msra.mxu1 %v4728_v62  ;;  %v5265_v62 = vld [vmem:[%s7507_s2 + $0x270] ss:$24 sps:$4 sm:$0xff]   ;;  %v547_v40 = vld [vmem:[%s7506_s1 + $0xbb8] sm:$0xff] }
 0x17c   : > { %2929 = vmatprep.subr.bf16.mxu1 %v4737_v0  ;;  %v5273_v0 = vld [vmem:[%s7507_s2 + $0x2a4] ss:$24 sps:$4 sm:$0xff]  }
 0x17d   : > { %4198 = vmatpush1.bf16.msra.mxu0 %v5247_v44  ;;  %v4889_v44 = vcombine.high %v543_v39, %v547_v40 }
 0x17e   : > { %4199 = vmatprep.subr.bf16.mxu0 %v5255_v43  ;;  %v555_v43 = vld [vmem:[%s7506_s1 + $0xbf8] sm:$0xff] }
 0x17f   : > { %2930 = vmatpush1.bf16.msra.mxu1 %v4736_v4  ;;  %v5271_v4 = vld [vmem:[%s7507_s2 + $0x2a0] ss:$24 sps:$4 sm:$0xff]  }
 0x180   : > { %2931 = vmatprep.subr.bf16.mxu1 %v4745_v6  ;;  %v4825_v6 = vcombine.high %v479_v2, %v483_v3  ;;  %v5234_v3 = vld [vmem:[%s7507_s2 + $0x15c] ss:$24 sps:$4 sm:$0xff]  }
 0x183   : > { %2932 = vmatpush1.bf16.msra.mxu1 %v4744_v10  ;;  %v5279_v10 = vld [vmem:[%s7507_s2 + $0x2d4] ss:$24 sps:$4 sm:$0xff]  }
 0x184   : > { %2933 = vmatprep.subr.bf16.mxu1 %v4753_v12  ;;  %v5277_v12 = vld [vmem:[%s7507_s2 + $0x2d0] ss:$24 sps:$4 sm:$0xff]  }
 0x187   : > { %2934 = vmatpush1.bf16.msra.mxu1 %v4752_v61  ;;  %v507_v61 = vld [vmem:[%s7506_s1 + $0xa78] sm:$0xff] }
 0x188   : > { %2935 = vmatprep.subr.bf16.mxu1 %v4761_v58  ;;  %v4840_v58 = vcombine.low %v495_v13, %v499_v14  ;;  %v4849_v20 = vcombine.high %v503_v17, %v507_v61  ;;  %v5264_v13 = vld [vmem:[%s7507_s2 + $0x24c] ss:$24 sps:$4 sm:$0xff]   ;;  %v5262_v14 = vld [vmem:[%s7507_s2 + $0x248] ss:$24 sps:$4 sm:$0xff]  }
 0x18b   : > { %2936 = vmatpush1.bf16.msra.mxu1 %v4760_v23  ;;  %v4848_v23 = vcombine.low %v503_v17, %v507_v61  ;;  %v5268_v17 = vld [vmem:[%s7507_s2 + $0x278] ss:$24 sps:$4 sm:$0xff]   ;;  %v4899_v61 = vmul.f32 -1.442695, %v6701_v35 }
 0x18c   : > { %2937 = vmatprep.subr.bf16.mxu1 %v4769_v25  ;;  %v519_v25 = vld [vmem:[%s7506_s1 + $0xad8] sm:$0xff] }
 0x18d   : > { %v4865_v28 = vcombine.high %v519_v25, %v523_v26 }
 0x18f   : > { %2938 = vmatpush1.bf16.msra.mxu1 %v4768_v29  ;;  %v527_v29 = vld [vmem:[%s7506_s1 + $0xb18] sm:$0xff] }
 0x190   : > { %2948 = vmatprep.subr.bf16.mxu1 %v4777_v33  ;;  %v4864_v33 = vcombine.low %v519_v25, %v523_v26  ;;  %v4873_v34 = vcombine.high %v527_v29, %v531_v30 }
 0x192   : > { %2940 = vmatmul.mubr.bf16.vlgmr.msra.gmra.mrb[8].mxu1 %v5872_v21  ;;  %v455_v21 = vld [vmem:[%s7506_s1 + $0x8d8] sm:$0xff] }
 0x193   : > { %2949 = vmatpush1.bf16.msra.mxu1 %v4776_v38  ;;  %2980 = vmatprep.mubr.bf16.mxu1 %v5888_v27  ;;  %v5253_v27 = vld [vmem:[%s7507_s2 + $0x210] ss:$24 sps:$4 sm:$0xff]   ;;  %v4801_v49 = vcombine.high %v455_v21, %v459_v46  ;;  %v4800_v55 = vcombine.low %v455_v21, %v459_v46  ;;  %v4872_v38 = vcombine.low %v527_v29, %v531_v30 }
 0x194   : > { %2950 = vmatprep.subr.bf16.mxu1 %v4785_v19  ;;  %4200 = vmatpush1.bf16.msra.mxu0 %v5253_v27  ;;  %v4881_v19 = vcombine.high %v535_v36, %v539_v37  ;;  %v5192_v27 = vld [vmem:[%s7507_s2 + $0xc] ss:$24 sps:$4 sm:$0xff]  }
 0x195   : > { %4201 = vmatprep.subr.bf16.mxu0 %v5261_v48  ;;  %v5198_v48 = vld [vmem:[%s7507_s2 + $0x3c] ss:$24 sps:$4 sm:$0xff]  }
 0x197   : > { %2951 = vmatpush1.bf16.msra.mxu1 %v4784_v42  ;;  %v551_v42 = vld [vmem:[%s7506_s1 + $0xbd8] sm:$0xff] }
 0x198   : > { %2952 = vmatprep.subr.bf16.mxu1 %v4793_v45  ;;  %4202 = vmatpush1.bf16.msra.mxu0 %v5259_v52  ;;  %v4888_v45 = vcombine.low %v543_v39, %v547_v40  ;;  %v4897_v21 = vcombine.high %v551_v42, %v555_v43  ;;  %v4896_v46 = vcombine.low %v551_v42, %v555_v43  ;;  %v5208_v52 = vld [vmem:[%s7507_s2 + $0x98] ss:$24 sps:$4 sm:$0xff]  }
 0x199   : > { %4203 = vmatprep.subr.bf16.mxu0 %v5267_v56  ;;  %v5214_v56 = vld [vmem:[%s7507_s2 + $0xc8] ss:$24 sps:$4 sm:$0xff]   ;;  %v5292_v43 = vld [vmem:[%s7507_s2 + $0x338] ss:$24 sps:$4 sm:$0xff]  }
 0x19a   : > { %v5283_v40 = vld [vmem:[%s7507_s2 + $0x300] ss:$24 sps:$4 sm:$0xff]   ;;  %v5289_v42 = vld [vmem:[%s7507_s2 + $0x330] ss:$24 sps:$4 sm:$0xff]  }
 0x19b   : > { %2953 = vmatpush1.bf16.msra.mxu1 %v4792_v47  ;;  %v5190_v47 = vld [vmem:[%s7507_s2 + $0x8] ss:$24 sps:$4 sm:$0xff]  }
 0x19c   : > { %2954 = vmatprep.subr.bf16.mxu1 %v4801_v49  ;;  %4204 = vmatpush1.bf16.msra.mxu0 %v5265_v62  ;;  %v5196_v49 = vld [vmem:[%s7507_s2 + $0x38] ss:$24 sps:$4 sm:$0xff]  }
 0x19d   : > { %4205 = vmatprep.subr.bf16.mxu0 %v5273_v0 }
 0x19f   : > { %2955 = vmatpush1.bf16.msra.mxu1 %v4800_v55  ;;  %v5216_v55 = vld [vmem:[%s7507_s2 + $0xcc] ss:$24 sps:$4 sm:$0xff]  }
 0x1a0   : > { %2956 = vmatprep.subr.bf16.mxu1 %v4809_v57  ;;  %4206 = vmatpush1.bf16.msra.mxu0 %v5271_v4  ;;  %v5222_v57 = vld [vmem:[%s7507_s2 + $0xfc] ss:$24 sps:$4 sm:$0xff]   ;;  %v5232_v4 = vld [vmem:[%s7507_s2 + $0x158] ss:$24 sps:$4 sm:$0xff]  }
 0x1a1   : > { %4207 = vmatprep.subr.bf16.mxu0 %v5279_v10  ;;  %v5250_v10 = vld [vmem:[%s7507_s2 + $0x1e8] ss:$24 sps:$4 sm:$0xff]  }
 0x1a3   : > { %2957 = vmatpush1.bf16.msra.mxu1 %v4808_v63 }
 0x1a4   : > { %2958 = vmatprep.subr.bf16.mxu1 %v4817_v1  ;;  %4208 = vmatpush1.bf16.msra.mxu0 %v5277_v12  ;;  %v5226_v1 = vld [vmem:[%s7507_s2 + $0x128] ss:$24 sps:$4 sm:$0xff]   ;;  %v5256_v12 = vld [vmem:[%s7507_s2 + $0x218] ss:$24 sps:$4 sm:$0xff]  }
 0x1a5   : > { %4218 = vmatprep.subr.bf16.mxu0 %v5285_v18  ;;  %v5276_v18 = vld [vmem:[%s7507_s2 + $0x2ac] ss:$24 sps:$4 sm:$0xff]  }
 0x1a7   : > { %2959 = vmatpush1.bf16.msra.mxu1 %v4816_v5  ;;  %v5240_v5 = vld [vmem:[%s7507_s2 + $0x18c] ss:$24 sps:$4 sm:$0xff]  }
 0x1a8   : > { %2960 = vmatprep.subr.bf16.mxu1 %v4825_v6  ;;  %v5238_v6 = vld [vmem:[%s7507_s2 + $0x188] ss:$24 sps:$4 sm:$0xff]  }
 0x1ab   : > { %2961 = vmatpush1.bf16.msra.mxu1 %v4824_v9  ;;  %v5252_v9 = vld [vmem:[%s7507_s2 + $0x1ec] ss:$24 sps:$4 sm:$0xff]  }
 0x1ac   : > { %2962 = vmatprep.subr.bf16.mxu1 %v4833_v11  ;;  %v5258_v11 = vld [vmem:[%s7507_s2 + $0x21c] ss:$24 sps:$4 sm:$0xff]  }
 0x1af   : > { %2963 = vmatpush1.bf16.msra.mxu1 %v4832_v15  ;;  %v5270_v15 = vld [vmem:[%s7507_s2 + $0x27c] ss:$24 sps:$4 sm:$0xff]  }
 0x1b0   : > { %2964 = vmatprep.subr.bf16.mxu1 %v4841_v16  ;;  %v4898_v16 = vmul.f32 -1.442695, %v6698_v31 }
 0x1b2   : > { %5475 = vpow2.f32 %v4898_v16  ;;  %v5345_v16 = vld [vmem:[%s7507_s2 + $0x4e4] ss:$24 sps:$4 sm:$0xff]  }
 0x1b3   : > { %2965 = vmatpush1.bf16.msra.mxu1 %v4840_v58  ;;  %v5274_v58 = vld [vmem:[%s7507_s2 + $0x2a8] ss:$24 sps:$4 sm:$0xff]   ;;  %5477 = vpow2.f32 %v4899_v61 }
 0x1b4   : > { %2966 = vmatprep.subr.bf16.mxu1 %v4849_v20  ;;  %v5282_v20 = vld [vmem:[%s7507_s2 + $0x2dc] ss:$24 sps:$4 sm:$0xff]   ;;  %v5343_v61 = vld [vmem:[%s7507_s2 + $0x4e0] ss:$24 sps:$4 sm:$0xff]  }
 0x1b7   : > { %2967 = vmatpush1.bf16.msra.mxu1 %v4848_v23 }
 0x1b8   : > { %2968 = vmatprep.subr.bf16.mxu1 %v4857_v24 }
 0x1bb   : > { %2969 = vmatpush1.bf16.msra.mxu1 %v4856_v54 }
 0x1bc   : > { %2970 = vmatprep.subr.bf16.mxu1 %v4865_v28  ;;  %v5476_v23 = vpop.eup %5475 }
 0x1bd   : > { %v5478_v24 = vpop.eup %5477  ;;  %v3001_v25 = vadd.f32 1.0, %v5476_v23  ;;  %v5357_v23 = vld [vmem:[%s7507_s2 + $0x544] ss:$24 sps:$4 sm:$0xff]  }
 0x1be   : > { %v3002_v26 = vadd.f32 1.0, %v5478_v24  ;;  %v5360_v24 = vld [vmem:[%s7507_s2 + $0x54c] ss:$24 sps:$4 sm:$0xff]  }
 0x1bf   : > { %2971 = vmatpush1.bf16.msra.mxu1 %v4864_v33  ;;  %5479 = vrcp.f32 %v3001_v25  ;;  %v5355_v25 = vld [vmem:[%s7507_s2 + $0x540] ss:$24 sps:$4 sm:$0xff]  }
 0x1c0   : > { %2972 = vmatprep.subr.bf16.mxu1 %v4873_v34  ;;  %5481 = vrcp.f32 %v3002_v26  ;;  %v5358_v26 = vld [vmem:[%s7507_s2 + $0x548] ss:$24 sps:$4 sm:$0xff]  }
 0x1c3   : > { %2973 = vmatpush1.bf16.msra.mxu1 %v4872_v38 }
 0x1c4   : > { %2974 = vmatprep.subr.bf16.mxu1 %v4881_v19 }
 0x1c7   : > { %2975 = vmatpush1.bf16.msra.mxu1 %v4880_v41  ;;  %v5286_v41 = vld [vmem:[%s7507_s2 + $0x308] ss:$24 sps:$4 sm:$0xff]  }
 0x1c8   : > { %2976 = vmatprep.subr.bf16.mxu1 %v4889_v44 }
 0x1c9   : > { %v5480_v54 = vpop.eup %5479 }
 0x1ca   : > { %v5482_v28 = vpop.eup %5481  ;;  %v3013_v29 = vmul.f32 %v5480_v54, %v6698_v31  ;;  %v5291_v31 = vld [vmem:[%s7507_s2 + $0x334] ss:$24 sps:$4 sm:$0xff]  }
 0x1cb   : > { %2977 = vmatpush1.bf16.msra.mxu1 %v4888_v45  ;;  %v3014_v33 = vmul.f32 %v5482_v28, %v6701_v35  ;;  %v5294_v35 = vld [vmem:[%s7507_s2 + $0x33c] ss:$24 sps:$4 sm:$0xff]  }
 0x1cc   : > { %2978 = vmatprep.subr.bf16.mxu1 %v4897_v21  ;;  %v5297_v45 = vld [vmem:[%s7507_s2 + $0x364] ss:$24 sps:$4 sm:$0xff]   ;;  %v5363_v54 = vld [vmem:[%s7507_s2 + $0x574] ss:$24 sps:$4 sm:$0xff]  }
 0x1cd   : > { %v5300_v21 = vld [vmem:[%s7507_s2 + $0x36c] ss:$24 sps:$4 sm:$0xff]   ;;  %v5366_v28 = vld [vmem:[%s7507_s2 + $0x57c] ss:$24 sps:$4 sm:$0xff]  }
 0x1cf   : > { %2979 = vmatpush1.bf16.msra.mxu1 %v4896_v46  ;;  %v5295_v46 = vld [vmem:[%s7507_s2 + $0x360] ss:$24 sps:$4 sm:$0xff]  }
 0x1d0   : > { %4259 = vmatprep.subr.bf16.mxu1 %v5192_v27  ;;  %v5298_v27 = vld [vmem:[%s7507_s2 + $0x368] ss:$24 sps:$4 sm:$0xff]  }
 0x1d2   : > { %2981 = vmatmul.mubr.bf16.vlgmr.msra.gmra.mrb[8].mxu1 %v6076_v32  ;;  %v5210_v32 = vld [vmem:[%s7507_s2 + $0x9c] ss:$24 sps:$4 sm:$0xff]  }
 0x1d3   : > { %4260 = vmatpush1.bf16.msra.mxu1 %v5190_v47  ;;  %v5303_v47 = vld [vmem:[%s7507_s2 + $0x394] ss:$24 sps:$4 sm:$0xff]  }
 0x1d4   : > { %4261 = vmatprep.subr.bf16.mxu1 %v5198_v48  ;;  %v5306_v48 = vld [vmem:[%s7507_s2 + $0x39c] ss:$24 sps:$4 sm:$0xff]  }
 0x1d7   : > { %4262 = vmatpush1.bf16.msra.mxu1 %v5196_v49  ;;  %v5301_v49 = vld [vmem:[%s7507_s2 + $0x390] ss:$24 sps:$4 sm:$0xff]  }
 0x1d8   : > { %4263 = vmatprep.subr.bf16.mxu1 %v5204_v50  ;;  %v5304_v50 = vld [vmem:[%s7507_s2 + $0x398] ss:$24 sps:$4 sm:$0xff]  }
 0x1db   : > { %4264 = vmatpush1.bf16.msra.mxu1 %v5202_v51  ;;  %v5309_v51 = vld [vmem:[%s7507_s2 + $0x3c4] ss:$24 sps:$4 sm:$0xff]  }
 0x1dc   : > { %4265 = vmatprep.subr.bf16.mxu1 %v5210_v32  ;;  %v5312_v32 = vld [vmem:[%s7507_s2 + $0x3cc] ss:$24 sps:$4 sm:$0xff]  }
 0x1df   : > { %4266 = vmatpush1.bf16.msra.mxu1 %v5208_v52  ;;  %v5307_v52 = vld [vmem:[%s7507_s2 + $0x3c0] ss:$24 sps:$4 sm:$0xff]  }
 0x1e0   : > { %4267 = vmatprep.subr.bf16.mxu1 %v5216_v55  ;;  %v5310_v55 = vld [vmem:[%s7507_s2 + $0x3c8] ss:$24 sps:$4 sm:$0xff]  }
 0x1e3   : > { %4268 = vmatpush1.bf16.msra.mxu1 %v5214_v56  ;;  %v5315_v56 = vld [vmem:[%s7507_s2 + $0x3f4] ss:$24 sps:$4 sm:$0xff]  }
 0x1e4   : > { %4269 = vmatprep.subr.bf16.mxu1 %v5222_v57  ;;  %v5318_v57 = vld [vmem:[%s7507_s2 + $0x3fc] ss:$24 sps:$4 sm:$0xff]  }
 0x1e5   : > { %v6988_v62 = vpop.f32.mrb[4].mxu1 }
 0x1e6   : > { %v6990_v63 = vpop.f32.mrb[5].mxu1 }
 0x1e7   : > { %v2740_v0 = vpop.f32.mrb[6].mxu1  ;;  %4270 = vmatpush1.bf16.msra.mxu1 %v5220_v59  ;;  %v5313_v59 = vld [vmem:[%s7507_s2 + $0x3f0] ss:$24 sps:$4 sm:$0xff]  }
 0x1e8   : > { %v2741_v2 = vpop.f32.mrb[7].mxu1  ;;  %4271 = vmatprep.subr.bf16.mxu1 %v5228_v60  ;;  %v5316_v60 = vld [vmem:[%s7507_s2 + $0x3f8] ss:$24 sps:$4 sm:$0xff]   ;;  %v5321_v0 = vld [vmem:[%s7507_s2 + $0x424] ss:$24 sps:$4 sm:$0xff]  }
 0x1e9   : > { %v5319_v2 = vld [vmem:[%s7507_s2 + $0x420] ss:$24 sps:$4 sm:$0xff]  }
 0x1eb   : > { %4272 = vmatpush1.bf16.msra.mxu1 %v5226_v1  ;;  %v5324_v1 = vld [vmem:[%s7507_s2 + $0x42c] ss:$24 sps:$4 sm:$0xff]  }
 0x1ec   : > { %4273 = vmatprep.subr.bf16.mxu1 %v5234_v3  ;;  %v5322_v3 = vld [vmem:[%s7507_s2 + $0x428] ss:$24 sps:$4 sm:$0xff]  }
 0x1ef   : > { %4274 = vmatpush1.bf16.msra.mxu1 %v5232_v4  ;;  %v5327_v4 = vld [vmem:[%s7507_s2 + $0x454] ss:$24 sps:$4 sm:$0xff]  }
 0x1f0   : > { %4275 = vmatprep.subr.bf16.mxu1 %v5240_v5  ;;  %v5330_v5 = vld [vmem:[%s7507_s2 + $0x45c] ss:$24 sps:$4 sm:$0xff]  }
 0x1f3   : > { %4276 = vmatpush1.bf16.msra.mxu1 %v5238_v6  ;;  %v5325_v6 = vld [vmem:[%s7507_s2 + $0x450] ss:$24 sps:$4 sm:$0xff]  }
 0x1f4   : > { %4277 = vmatprep.subr.bf16.mxu1 %v5246_v7  ;;  %v5328_v7 = vld [vmem:[%s7507_s2 + $0x458] ss:$24 sps:$4 sm:$0xff]  }
 0x1f7   : > { %4278 = vmatpush1.bf16.msra.mxu1 %v5244_v8  ;;  %v5333_v8 = vld [vmem:[%s7507_s2 + $0x484] ss:$24 sps:$4 sm:$0xff]  }
 0x1f8   : > { %4279 = vmatprep.subr.bf16.mxu1 %v5252_v9  ;;  %v5336_v9 = vld [vmem:[%s7507_s2 + $0x48c] ss:$24 sps:$4 sm:$0xff]  }
 0x1fb   : > { %4280 = vmatpush1.bf16.msra.mxu1 %v5250_v10  ;;  %v5331_v10 = vld [vmem:[%s7507_s2 + $0x480] ss:$24 sps:$4 sm:$0xff]  }
 0x1fc   : > { %4281 = vmatprep.subr.bf16.mxu1 %v5258_v11  ;;  %v5334_v11 = vld [vmem:[%s7507_s2 + $0x488] ss:$24 sps:$4 sm:$0xff]  }
 0x1ff   : > { %4282 = vmatpush1.bf16.msra.mxu1 %v5256_v12  ;;  %v5339_v12 = vld [vmem:[%s7507_s2 + $0x4b4] ss:$24 sps:$4 sm:$0xff]  }
 0x200   : > { %4283 = vmatprep.subr.bf16.mxu1 %v5264_v13  ;;  %v5342_v13 = vld [vmem:[%s7507_s2 + $0x4bc] ss:$24 sps:$4 sm:$0xff]  }
 0x203   : > { %4284 = vmatpush1.bf16.msra.mxu1 %v5262_v14  ;;  %v5337_v14 = vld [vmem:[%s7507_s2 + $0x4b0] ss:$24 sps:$4 sm:$0xff]  }
 0x204   : > { %4285 = vmatprep.subr.bf16.mxu1 %v5270_v15  ;;  %v5340_v15 = vld [vmem:[%s7507_s2 + $0x4b8] ss:$24 sps:$4 sm:$0xff]  }
 0x207   : > { %4286 = vmatpush1.bf16.msra.mxu1 %v5268_v17  ;;  %v5348_v17 = vld [vmem:[%s7507_s2 + $0x4ec] ss:$24 sps:$4 sm:$0xff]  }
 0x208   : > { %4287 = vmatprep.subr.bf16.mxu1 %v5276_v18  ;;  %v5346_v18 = vld [vmem:[%s7507_s2 + $0x4e8] ss:$24 sps:$4 sm:$0xff]  }
 0x20b   : > { %4288 = vmatpush1.bf16.msra.mxu1 %v5274_v58  ;;  %v5351_v58 = vld [vmem:[%s7507_s2 + $0x514] ss:$24 sps:$4 sm:$0xff]  }
 0x20c   : > { %4289 = vmatprep.subr.bf16.mxu1 %v5282_v20  ;;  %v5354_v20 = vld [vmem:[%s7507_s2 + $0x51c] ss:$24 sps:$4 sm:$0xff]  }
 0x20f   : > { %4290 = vmatpush1.bf16.msra.mxu1 %v5280_v22  ;;  %v5349_v22 = vld [vmem:[%s7507_s2 + $0x510] ss:$24 sps:$4 sm:$0xff]  }
 0x210   : > { %4300 = vmatprep.subr.bf16.mxu1 %v5288_v53  ;;  %v5352_v53 = vld [vmem:[%s7507_s2 + $0x518] ss:$24 sps:$4 sm:$0xff]  }
 0x227   : > { %v2859_v30 = vpop.f32.mrb[4].mxu0 }
 0x228   : > { %v3017_v34 = vmul.f32 %v3013_v29, %v2859_v30  ;;  %v2861_v36 = vpop.f32.mrb[5].mxu0  ;;  %v5361_v29 = vld [vmem:[%s7507_s2 + $0x570] ss:$24 sps:$4 sm:$0xff]  }
 0x229   : > { %v3018_v37 = vmul.f32 %v3014_v33, %v2861_v36  ;;  %v2863_v38 = vpop.f32.mrb[6].mxu0  ;;  %v5364_v30 = vld [vmem:[%s7507_s2 + $0x578] ss:$24 sps:$4 sm:$0xff]   ;;  %v5369_v33 = vld [vmem:[%s7507_s2 + $0x5a4] ss:$24 sps:$4 sm:$0xff]  }
 0x22a   : > { %v2864_v19 = vpop.f32.mrb[7].mxu0  ;;  %v7064_v44 = vpack.c.bf16 %v3017_v34, %v3017_v34  ;;  %v5372_v34 = vld [vmem:[%s7507_s2 + $0x5ac] ss:$24 sps:$4 sm:$0xff]   ;;  %v5367_v36 = vld [vmem:[%s7507_s2 + $0x5a0] ss:$24 sps:$4 sm:$0xff]  }
 0x22b   : > { %v7056_v39 = vpack.c.bf16 %v3018_v37, %v3018_v37  ;;  %v5370_v37 = vld [vmem:[%s7507_s2 + $0x5a8] ss:$24 sps:$4 sm:$0xff]   ;;  %v5375_v38 = vld [vmem:[%s7507_s2 + $0x5d4] ss:$24 sps:$4 sm:$0xff]  }
 0x22c   : > { %v5378_v19 = vld [vmem:[%s7507_s2 + $0x5dc] ss:$24 sps:$4 sm:$0xff]  }
 0x22d   : > { %4209 = vmatprep.mubr.bf16.mxu0 %v7056_v39  ;;  %4291 = vmatprep.mubr.bf16.mxu1 %v7056_v39 }
 0x22e   : > { %4210 = vmatmul.mubr.bf16.vlgmr.msra.gmra.mrb[8].mxu0 %v7064_v44  ;;  %4292 = vmatmul.mubr.bf16.vlgmr.msra.gmra.mrb[12].mxu1 %v7064_v44 }
 0x22f   : > { %4219 = vmatpush1.bf16.msra.mxu0 %v5283_v40  ;;  %4301 = vmatpush1.bf16.msra.mxu1 %v5286_v41  ;;  %v5373_v40 = vld [vmem:[%s7507_s2 + $0x5d0] ss:$24 sps:$4 sm:$0xff]  }
 0x230   : > { %4220 = vmatprep.subr.bf16.mxu0 %v5291_v31  ;;  %4302 = vmatprep.subr.bf16.mxu1 %v5294_v35  ;;  %v5376_v41 = vld [vmem:[%s7507_s2 + $0x5d8] ss:$24 sps:$4 sm:$0xff]   ;;  %v5381_v31 = vld [vmem:[%s7507_s2 + $0x14] ss:$24 sps:$4 sm:$0xff]   ;;  %v4900_v35 = vmul.f32 -1.442695, %v6988_v62 }
 0x232   : > { %5483 = vpow2.f32 %v4900_v35  ;;  %v5448_v35 = vld [vmem:[%s7507_s2 + $0x460] ss:$24 sps:$4 sm:$0xff]  }
 0x233   : > { %4221 = vmatpush1.bf16.msra.mxu0 %v5289_v42  ;;  %4303 = vmatpush1.bf16.msra.mxu1 %v5292_v43  ;;  %v4901_v42 = vmul.f32 -1.442695, %v6990_v63 }
 0x234   : > { %4222 = vmatprep.subr.bf16.mxu0 %v5297_v45  ;;  %4304 = vmatprep.subr.bf16.mxu1 %v5300_v21 }
 0x235   : > { %5485 = vpow2.f32 %v4901_v42  ;;  %v5453_v42 = vld [vmem:[%s7507_s2 + $0x494] ss:$24 sps:$4 sm:$0xff]  }
 0x237   : > { %4223 = vmatpush1.bf16.msra.mxu0 %v5295_v46  ;;  %4305 = vmatpush1.bf16.msra.mxu1 %v5298_v27 }
 0x238   : > { %4224 = vmatprep.subr.bf16.mxu0 %v5303_v47  ;;  %4306 = vmatprep.subr.bf16.mxu1 %v5306_v48 }
 0x23b   : > { %4225 = vmatpush1.bf16.msra.mxu0 %v5301_v49  ;;  %4307 = vmatpush1.bf16.msra.mxu1 %v5304_v50 }
 0x23c   : > { %4226 = vmatprep.subr.bf16.mxu0 %v5309_v51  ;;  %4308 = vmatprep.subr.bf16.mxu1 %v5312_v32  ;;  %v5484_v43 = vpop.eup %5483 }
 0x23d   : > { %v3003_v21 = vadd.f32 1.0, %v5484_v43  ;;  %v5451_v43 = vld [vmem:[%s7507_s2 + $0x490] ss:$24 sps:$4 sm:$0xff]  }
 0x23f   : > { %4227 = vmatpush1.bf16.msra.mxu0 %v5307_v52  ;;  %4309 = vmatpush1.bf16.msra.mxu1 %v5310_v55  ;;  %v5486_v45 = vpop.eup %5485  ;;  %5487 = vrcp.f32 %v3003_v21  ;;  %v5454_v21 = vld [vmem:[%s7507_s2 + $0x4c0] ss:$24 sps:$4 sm:$0xff]  }
 0x240   : > { %4228 = vmatprep.subr.bf16.mxu0 %v5315_v56  ;;  %4310 = vmatprep.subr.bf16.mxu1 %v5318_v57  ;;  %v3004_v46 = vadd.f32 1.0, %v5486_v45  ;;  %v5456_v45 = vld [vmem:[%s7507_s2 + $0x4c4] ss:$24 sps:$4 sm:$0xff]  }
 0x242   : > { %5489 = vrcp.f32 %v3004_v46  ;;  %v5459_v46 = vld [vmem:[%s7507_s2 + $0x4f4] ss:$24 sps:$4 sm:$0xff]  }
 0x243   : > { %4229 = vmatpush1.bf16.msra.mxu0 %v5313_v59  ;;  %4311 = vmatpush1.bf16.msra.mxu1 %v5316_v60  ;;  %v5379_v59 = vld [vmem:[%s7507_s2 + $0x10] ss:$24 sps:$4 sm:$0xff]  }
 0x244   : > { %4230 = vmatprep.subr.bf16.mxu0 %v5321_v0  ;;  %4312 = vmatprep.subr.bf16.mxu1 %v5324_v1  ;;  %v5387_v0 = vld [vmem:[%s7507_s2 + $0x74] ss:$24 sps:$4 sm:$0xff]   ;;  %v5385_v1 = vld [vmem:[%s7507_s2 + $0x70] ss:$24 sps:$4 sm:$0xff]  }
 0x247   : > { %4231 = vmatpush1.bf16.msra.mxu0 %v5319_v2  ;;  %4313 = vmatpush1.bf16.msra.mxu1 %v5322_v3  ;;  %v5390_v2 = vld [vmem:[%s7507_s2 + $0xa4] ss:$24 sps:$4 sm:$0xff]   ;;  %v5393_v3 = vld [vmem:[%s7507_s2 + $0xd4] ss:$24 sps:$4 sm:$0xff]  }
 0x248   : > { %4232 = vmatprep.subr.bf16.mxu0 %v5327_v4  ;;  %4314 = vmatprep.subr.bf16.mxu1 %v5330_v5  ;;  %v5391_v4 = vld [vmem:[%s7507_s2 + $0xd0] ss:$24 sps:$4 sm:$0xff]   ;;  %v5396_v5 = vld [vmem:[%s7507_s2 + $0x104] ss:$24 sps:$4 sm:$0xff]  }
 0x249   : > { %v5488_v27 = vpop.eup %5487 }
 0x24a   : > { %v3015_v48 = vmul.f32 %v5488_v27, %v6988_v62  ;;  %v5384_v62 = vld [vmem:[%s7507_s2 + $0x44] ss:$24 sps:$4 sm:$0xff]   ;;  %v5457_v27 = vld [vmem:[%s7507_s2 + $0x4f0] ss:$24 sps:$4 sm:$0xff]  }
 0x24b   : > { %4233 = vmatpush1.bf16.msra.mxu0 %v5325_v6  ;;  %4315 = vmatpush1.bf16.msra.mxu1 %v5328_v7  ;;  %v5394_v6 = vld [vmem:[%s7507_s2 + $0x100] ss:$24 sps:$4 sm:$0xff]   ;;  %v5399_v7 = vld [vmem:[%s7507_s2 + $0x134] ss:$24 sps:$4 sm:$0xff]  }
 0x24c   : > { %4234 = vmatprep.subr.bf16.mxu0 %v5333_v8  ;;  %4316 = vmatprep.subr.bf16.mxu1 %v5336_v9  ;;  %v5490_v47 = vpop.eup %5489  ;;  %v5397_v8 = vld [vmem:[%s7507_s2 + $0x130] ss:$24 sps:$4 sm:$0xff]   ;;  %v5402_v9 = vld [vmem:[%s7507_s2 + $0x164] ss:$24 sps:$4 sm:$0xff]  }
 0x24d   : > { %v3016_v49 = vmul.f32 %v5490_v47, %v6990_v63  ;;  %v5382_v63 = vld [vmem:[%s7507_s2 + $0x40] ss:$24 sps:$4 sm:$0xff]   ;;  %v5462_v47 = vld [vmem:[%s7507_s2 + $0x524] ss:$24 sps:$4 sm:$0xff]  }
 0x24f   : > { %4235 = vmatpush1.bf16.msra.mxu0 %v5331_v10  ;;  %4317 = vmatpush1.bf16.msra.mxu1 %v5334_v11  ;;  %v5400_v10 = vld [vmem:[%s7507_s2 + $0x160] ss:$24 sps:$4 sm:$0xff]   ;;  %v5405_v11 = vld [vmem:[%s7507_s2 + $0x194] ss:$24 sps:$4 sm:$0xff]  }
 0x250   : > { %4236 = vmatprep.subr.bf16.mxu0 %v5339_v12  ;;  %4318 = vmatprep.subr.bf16.mxu1 %v5342_v13  ;;  %v5403_v12 = vld [vmem:[%s7507_s2 + $0x190] ss:$24 sps:$4 sm:$0xff]   ;;  %v5408_v13 = vld [vmem:[%s7507_s2 + $0x1c4] ss:$24 sps:$4 sm:$0xff]  }
 0x253   : > { %4237 = vmatpush1.bf16.msra.mxu0 %v5337_v14  ;;  %4319 = vmatpush1.bf16.msra.mxu1 %v5340_v15  ;;  %v5406_v14 = vld [vmem:[%s7507_s2 + $0x1c0] ss:$24 sps:$4 sm:$0xff]   ;;  %v5411_v15 = vld [vmem:[%s7507_s2 + $0x1f4] ss:$24 sps:$4 sm:$0xff]  }
 0x254   : > { %4238 = vmatprep.subr.bf16.mxu0 %v5345_v16  ;;  %4320 = vmatprep.subr.bf16.mxu1 %v5348_v17  ;;  %v5409_v16 = vld [vmem:[%s7507_s2 + $0x1f0] ss:$24 sps:$4 sm:$0xff]   ;;  %v5414_v17 = vld [vmem:[%s7507_s2 + $0x224] ss:$24 sps:$4 sm:$0xff]  }
 0x257   : > { %4239 = vmatpush1.bf16.msra.mxu0 %v5343_v61  ;;  %4321 = vmatpush1.bf16.msra.mxu1 %v5346_v18  ;;  %v5412_v61 = vld [vmem:[%s7507_s2 + $0x220] ss:$24 sps:$4 sm:$0xff]   ;;  %v5417_v18 = vld [vmem:[%s7507_s2 + $0x254] ss:$24 sps:$4 sm:$0xff]  }
 0x258   : > { %4240 = vmatprep.subr.bf16.mxu0 %v5351_v58  ;;  %4322 = vmatprep.subr.bf16.mxu1 %v5354_v20  ;;  %v5415_v58 = vld [vmem:[%s7507_s2 + $0x250] ss:$24 sps:$4 sm:$0xff]   ;;  %v5420_v20 = vld [vmem:[%s7507_s2 + $0x284] ss:$24 sps:$4 sm:$0xff]  }
 0x25b   : > { %4241 = vmatpush1.bf16.msra.mxu0 %v5349_v22  ;;  %4323 = vmatpush1.bf16.msra.mxu1 %v5352_v53  ;;  %v5418_v22 = vld [vmem:[%s7507_s2 + $0x280] ss:$24 sps:$4 sm:$0xff]   ;;  %v5423_v53 = vld [vmem:[%s7507_s2 + $0x2b4] ss:$24 sps:$4 sm:$0xff]  }
 0x25c   : > { %4242 = vmatprep.subr.bf16.mxu0 %v5357_v23  ;;  %4324 = vmatprep.subr.bf16.mxu1 %v5360_v24  ;;  %v5421_v23 = vld [vmem:[%s7507_s2 + $0x2b0] ss:$24 sps:$4 sm:$0xff]   ;;  %v5426_v24 = vld [vmem:[%s7507_s2 + $0x2e4] ss:$24 sps:$4 sm:$0xff]  }
 0x25f   : > { %4243 = vmatpush1.bf16.msra.mxu0 %v5355_v25  ;;  %4325 = vmatpush1.bf16.msra.mxu1 %v5358_v26  ;;  %v5424_v25 = vld [vmem:[%s7507_s2 + $0x2e0] ss:$24 sps:$4 sm:$0xff]   ;;  %v5429_v26 = vld [vmem:[%s7507_s2 + $0x314] ss:$24 sps:$4 sm:$0xff]  }
 0x260   : > { %4244 = vmatprep.subr.bf16.mxu0 %v5363_v54  ;;  %4326 = vmatprep.subr.bf16.mxu1 %v5366_v28  ;;  %v5427_v54 = vld [vmem:[%s7507_s2 + $0x310] ss:$24 sps:$4 sm:$0xff]   ;;  %v5432_v28 = vld [vmem:[%s7507_s2 + $0x344] ss:$24 sps:$4 sm:$0xff]  }
 0x263   : > { %4245 = vmatpush1.bf16.msra.mxu0 %v5361_v29  ;;  %4327 = vmatpush1.bf16.msra.mxu1 %v5364_v30  ;;  %v5430_v29 = vld [vmem:[%s7507_s2 + $0x340] ss:$24 sps:$4 sm:$0xff]   ;;  %v5435_v30 = vld [vmem:[%s7507_s2 + $0x374] ss:$24 sps:$4 sm:$0xff]  }
 0x264   : > { %4246 = vmatprep.subr.bf16.mxu0 %v5369_v33  ;;  %4328 = vmatprep.subr.bf16.mxu1 %v5372_v34  ;;  %v5433_v33 = vld [vmem:[%s7507_s2 + $0x370] ss:$24 sps:$4 sm:$0xff]   ;;  %v5436_v34 = vld [vmem:[%s7507_s2 + $0x3a0] ss:$24 sps:$4 sm:$0xff]  }
 0x267   : > { %4247 = vmatpush1.bf16.msra.mxu0 %v5367_v36  ;;  %4329 = vmatpush1.bf16.msra.mxu1 %v5370_v37  ;;  %v5441_v36 = vld [vmem:[%s7507_s2 + $0x3d4] ss:$24 sps:$4 sm:$0xff]   ;;  %v5439_v37 = vld [vmem:[%s7507_s2 + $0x3d0] ss:$24 sps:$4 sm:$0xff]  }
 0x268   : > { %4248 = vmatprep.subr.bf16.mxu0 %v5375_v38  ;;  %4330 = vmatprep.subr.bf16.mxu1 %v5378_v19  ;;  %v5444_v38 = vld [vmem:[%s7507_s2 + $0x404] ss:$24 sps:$4 sm:$0xff]   ;;  %v5442_v19 = vld [vmem:[%s7507_s2 + $0x400] ss:$24 sps:$4 sm:$0xff]  }
 0x26b   : > { %4249 = vmatpush1.bf16.msra.mxu0 %v5373_v40  ;;  %4331 = vmatpush1.bf16.msra.mxu1 %v5376_v41  ;;  %v5447_v40 = vld [vmem:[%s7507_s2 + $0x434] ss:$24 sps:$4 sm:$0xff]   ;;  %v5445_v41 = vld [vmem:[%s7507_s2 + $0x430] ss:$24 sps:$4 sm:$0xff]  }
 0x26c   : > { %4341 = vmatprep.subr.bf16.mxu0 %v5381_v31  ;;  %v5450_v31 = vld [vmem:[%s7507_s2 + $0x464] ss:$24 sps:$4 sm:$0xff]  }
 0x2a5   : > { %v2982_v50 = vpop.f32.mrb[8].mxu1 }
 0x2a6   : > { %v3019_v51 = vmul.f32 %v3015_v48, %v2982_v50  ;;  %v2984_v32 = vpop.f32.mrb[9].mxu1  ;;  %v5460_v48 = vld [vmem:[%s7507_s2 + $0x520] ss:$24 sps:$4 sm:$0xff]   ;;  %v5463_v50 = vld [vmem:[%s7507_s2 + $0x550] ss:$24 sps:$4 sm:$0xff]  }
 0x2a7   : > { %v3020_v52 = vmul.f32 %v3016_v49, %v2984_v32  ;;  %v2986_v55 = vpop.f32.mrb[10].mxu1  ;;  %v5465_v49 = vld [vmem:[%s7507_s2 + $0x554] ss:$24 sps:$4 sm:$0xff]   ;;  %v5466_v32 = vld [vmem:[%s7507_s2 + $0x580] ss:$24 sps:$4 sm:$0xff]  }
 0x2a8   : > { %v2987_v56 = vpop.f32.mrb[11].mxu1  ;;  %v7262_v60 = vpack.c.bf16 %v3019_v51, %v3019_v51  ;;  %v5468_v51 = vld [vmem:[%s7507_s2 + $0x584] ss:$24 sps:$4 sm:$0xff]   ;;  %v5469_v55 = vld [vmem:[%s7507_s2 + $0x5b0] ss:$24 sps:$4 sm:$0xff]  }
 0x2a9   : > { %v7257_v57 = vpack.c.bf16 %v3020_v52, %v3020_v52  ;;  %v5471_v52 = vld [vmem:[%s7507_s2 + $0x5b4] ss:$24 sps:$4 sm:$0xff]   ;;  %v5474_v56 = vld [vmem:[%s7507_s2 + $0x5e4] ss:$24 sps:$4 sm:$0xff]  }
 0x2ab   : > { %4250 = vmatprep.mubr.bf16.mxu0 %v7257_v57  ;;  %4332 = vmatprep.mubr.bf16.mxu1 %v7257_v57 }
 0x2ac   : > { %4251 = vmatmul.mubr.bf16.vlgmr.msra.gmra.mrb[8].mxu0 %v7262_v60  ;;  %4333 = vmatmul.mubr.bf16.vlgmr.msra.gmra.mrb[12].mxu1 %v7262_v60 }
 0x2ad   : > { %4342 = vmatpush1.bf16.msra.mxu0 %v5379_v59  ;;  %4373 = vmatprep.mubr.bf16.mxu0 %v7056_v39  ;;  %v5388_v39 = vld [vmem:[%s7507_s2 + $0xa0] ss:$24 sps:$4 sm:$0xff]  }
 0x2ae   : > { %4343 = vmatprep.subr.bf16.mxu0 %v5384_v62 }
 0x2b1   : > { %4344 = vmatpush1.bf16.msra.mxu0 %v5382_v63 }
 0x2b2   : > { %4345 = vmatprep.subr.bf16.mxu0 %v5387_v0 }
 0x2b5   : > { %4346 = vmatpush1.bf16.msra.mxu0 %v5385_v1 }
 0x2b6   : > { %4347 = vmatprep.subr.bf16.mxu0 %v5390_v2 }
 0x2b9   : > { %4348 = vmatpush1.bf16.msra.mxu0 %v5388_v39 }
 0x2ba   : > { %4349 = vmatprep.subr.bf16.mxu0 %v5393_v3 }
 0x2bd   : > { %4350 = vmatpush1.bf16.msra.mxu0 %v5391_v4 }
 0x2be   : > { %4351 = vmatprep.subr.bf16.mxu0 %v5396_v5 }
 0x2c1   : > { %4352 = vmatpush1.bf16.msra.mxu0 %v5394_v6 }
 0x2c2   : > { %4353 = vmatprep.subr.bf16.mxu0 %v5399_v7 }
 0x2c5   : > { %4354 = vmatpush1.bf16.msra.mxu0 %v5397_v8 }
 0x2c6   : > { %4355 = vmatprep.subr.bf16.mxu0 %v5402_v9 }
 0x2c9   : > { %4356 = vmatpush1.bf16.msra.mxu0 %v5400_v10 }
 0x2ca   : > { %4357 = vmatprep.subr.bf16.mxu0 %v5405_v11 }
 0x2cd   : > { %4358 = vmatpush1.bf16.msra.mxu0 %v5403_v12 }
 0x2ce   : > { %4359 = vmatprep.subr.bf16.mxu0 %v5408_v13 }
 0x2d1   : > { %4360 = vmatpush1.bf16.msra.mxu0 %v5406_v14 }
 0x2d2   : > { %4361 = vmatprep.subr.bf16.mxu0 %v5411_v15 }
 0x2d5   : > { %4362 = vmatpush1.bf16.msra.mxu0 %v5409_v16 }
 0x2d6   : > { %4363 = vmatprep.subr.bf16.mxu0 %v5414_v17 }
 0x2d9   : > { %4364 = vmatpush1.bf16.msra.mxu0 %v5412_v61 }
 0x2da   : > { %4365 = vmatprep.subr.bf16.mxu0 %v5417_v18 }
 0x2dd   : > { %4366 = vmatpush1.bf16.msra.mxu0 %v5415_v58 }
 0x2de   : > { %4367 = vmatprep.subr.bf16.mxu0 %v5420_v20 }
 0x2e1   : > { %4368 = vmatpush1.bf16.msra.mxu0 %v5418_v22 }
 0x2e2   : > { %4369 = vmatprep.subr.bf16.mxu0 %v5423_v53 }
 0x2e5   : > { %4370 = vmatpush1.bf16.msra.mxu0 %v5421_v23 }
 0x2e6   : > { %4371 = vmatprep.subr.bf16.mxu0 %v5426_v24 }
 0x2e9   : > { %4372 = vmatpush1.bf16.msra.mxu0 %v5424_v25 }
 0x2ea   : > { %4382 = vmatprep.subr.bf16.mxu0 %v5429_v26 }
 0x2ec   : > { %4374 = vmatmul.mubr.bf16.vlgmr.msra.gmra.mrb[12].mxu0 %v7064_v44  ;;  %v5438_v44 = vld [vmem:[%s7507_s2 + $0x3a4] ss:$24 sps:$4 sm:$0xff]  }
 0x2ed   : > { %4383 = vmatpush1.bf16.msra.mxu0 %v5427_v54  ;;  %4414 = vmatprep.mubr.bf16.mxu0 %v7257_v57  ;;  %v5472_v57 = vld [vmem:[%s7507_s2 + $0x5e0] ss:$24 sps:$4 sm:$0xff]  }
 0x2ee   : > { %4384 = vmatprep.subr.bf16.mxu0 %v5432_v28 }
 0x2f1   : > { %4385 = vmatpush1.bf16.msra.mxu0 %v5430_v29 }
 0x2f2   : > { %4386 = vmatprep.subr.bf16.mxu0 %v5435_v30 }
 0x2f5   : > { %4387 = vmatpush1.bf16.msra.mxu0 %v5433_v33 }
 0x2f6   : > { %4388 = vmatprep.subr.bf16.mxu0 %v5438_v44 }
 0x2f9   : > { %4389 = vmatpush1.bf16.msra.mxu0 %v5436_v34 }
 0x2fa   : > { %4390 = vmatprep.subr.bf16.mxu0 %v5441_v36 }
 0x2fd   : > { %4391 = vmatpush1.bf16.msra.mxu0 %v5439_v37 }
 0x2fe   : > { %4392 = vmatprep.subr.bf16.mxu0 %v5444_v38 }
 0x301   : > { %4393 = vmatpush1.bf16.msra.mxu0 %v5442_v19 }
 0x302   : > { %4394 = vmatprep.subr.bf16.mxu0 %v5447_v40 }
 0x305   : > { %4395 = vmatpush1.bf16.msra.mxu0 %v5445_v41 }
 0x306   : > { %4396 = vmatprep.subr.bf16.mxu0 %v5450_v31 }
 0x309   : > { %4397 = vmatpush1.bf16.msra.mxu0 %v5448_v35 }
 0x30a   : > { %4398 = vmatprep.subr.bf16.mxu0 %v5453_v42 }
 0x30d   : > { %4399 = vmatpush1.bf16.msra.mxu0 %v5451_v43 }
 0x30e   : > { %4400 = vmatprep.subr.bf16.mxu0 %v5456_v45 }
 0x311   : > { %4401 = vmatpush1.bf16.msra.mxu0 %v5454_v21 }
 0x312   : > { %4402 = vmatprep.subr.bf16.mxu0 %v5459_v46 }
 0x315   : > { %4403 = vmatpush1.bf16.msra.mxu0 %v5457_v27 }
 0x316   : > { %4404 = vmatprep.subr.bf16.mxu0 %v5462_v47 }
 0x319   : > { %4405 = vmatpush1.bf16.msra.mxu0 %v5460_v48 }
 0x31a   : > { %4406 = vmatprep.subr.bf16.mxu0 %v5465_v49 }
 0x31d   : > { %4407 = vmatpush1.bf16.msra.mxu0 %v5463_v50 }
 0x31e   : > { %4408 = vmatprep.subr.bf16.mxu0 %v5468_v51 }
 0x321   : > { %4409 = vmatpush1.bf16.msra.mxu0 %v5466_v32 }
 0x322   : > { %4410 = vmatprep.subr.bf16.mxu0 %v5471_v52 }
 0x325   : > { %4411 = vmatpush1.bf16.msra.mxu0 %v5469_v55 }
 0x326   : > { %4412 = vmatprep.subr.bf16.mxu0 %v5474_v56 }
 0x329   : > { %4413 = vmatpush1.bf16.msra.mxu0 %v5472_v57 }
 0x32c   : > { %4415 = vmatmul.mubr.bf16.vlgmr.msra.gmra.mrb[12].mxu0 %v7262_v60 }
 0x37f   : > { %v4252_v59 = vpop.f32.mrb[8].mxu0  ;;  %v4334_v62 = vpop.f32.mrb[12].mxu1 }
 0x380   : > { %4423 = vst [vmem:[%s163_s9] sm:$0xff] %v4252_v59  ;;  %4425 = vst [vmem:[%s163_s9 + $0x10] sm:$0xff] %v4334_v62  ;;  %v4254_v63 = vpop.f32.mrb[9].mxu0  ;;  %v4336_v0 = vpop.f32.mrb[13].mxu1 }
 0x381   : > { %4424 = vst [vmem:[%s163_s9 + $0x8] sm:$0xff] %v4254_v63  ;;  %4426 = vst [vmem:[%s163_s9 + $0x18] sm:$0xff] %v4336_v0  ;;  %v4256_v1 = vpop.f32.mrb[10].mxu0  ;;  %v4338_v2 = vpop.f32.mrb[14].mxu1 }
 0x382   : > { %v4257_v39 = vpop.f32.mrb[11].mxu0  ;;  %v4339_v3 = vpop.f32.mrb[15].mxu1 }
 0x3ff   : > { %v4416_v60 = vpop.f32.mrb[12].mxu0 }
 0x400   : > { %4427 = vst [vmem:[%s163_s9 + $0x20] sm:$0xff] %v4416_v60  ;;  %v4418_v4 = vpop.f32.mrb[13].mxu0 }
 0x401   : > { %4428 = vst [vmem:[%s163_s9 + $0x28] sm:$0xff] %v4418_v4  ;;  %v4420_v5 = vpop.f32.mrb[14].mxu0 }
 0x402   : > { %v4421_v6 = vpop.f32.mrb[15].mxu0 }
 0x403   : > { %5504 = shalt.err (!%p5501_p3)
}
 0x404   : > { %s5505_s28 = scalar_lea.hbm %s7463_s19, 768  ;;  %s5509_s4 = scalar_lea.hbm %s7508_s3, 1536 }
 0x405   : > { %p5506_p4 = scmp.ne.s32.totalorder %s7463_s19, %s5505_s28  ;;  %p5510_p9 = scmp.lt.u32.totalorder %s7463_s19, %s7508_s3 }
 0x406   : > { %p5511_p10 = scmp.lt.u32.totalorder %s5509_s4, %s5505_s28  ;;  %p5513_p12 = scmp.lt.u32.totalorder %s5505_s28, %s7463_s19 }
 0x407   : > { %p5507_p7 = pnand %p5506_p4, %p5614_p5 }
 0x408   : > { %p5512_p11 = por %p5511_p10, %p5510_p9 }
 0x409   : > { %p5508_p8 = pneg %p5507_p7 }
 0x40a   : > { %p5514_p13 = por %p5513_p12, %p5512_p11 }
 0x40c   : > { %p5515_p0 = pnand %p5514_p13, %p5508_p8 }
 0x40e   : > { %5518 = shalt.err (!%p5515_p0)
}
 0x40f   : > { %5142 = dma.vmem_to_hbm [thread:$0]  (%p5614_p5), %s7465_s26, 768, %s7463_s19, %s4430_s20  }
 0x410 PF: > { %p5148_p1 = scmp.ge.s32.totalorder %s5553_s15, 2  ;;  %s4456_s7 = sand.u32 1, %s5541_s12  }
 0x411   : > { %s4457_s8 = scalar_lea.sflag [#allocation3], %s4456_s7 }
 0x412   : > { %p5145_p2 = pnand %p5148_p1, %p5618_p6 }
 0x414   : > { %5536 = dma.done.wait (!%p5145_p2), %s4457_s8, 768  }
 0x415   : > { %5538 = vsyncadd (!%p5145_p2), %s4457_s8, 4294966528  ;;  %p13_p3 = scmp.ge.s32.totalorder %s5601_s18, 4   ;;  %s7511_s12 = smov %s5545_s13 }
 0x416   : > { %s7512_s13 = smov %s5549_s14  ;;  %s7513_s14 = smov %s5612_s21 }
 0x417   : > { %s7514_s15 = smov %s5601_s18  ;;  %15 = sbr.rel (!%p13_p3) target bundleno = 3 (0x3), region = 67 }
 0x41e   :  { %4462 = vsyncpa [#allocation3], 1 }
 0x41f   :  { %4464 = vsyncpa [#allocation3 + $0x1], 1 }

</bundles_post_ra>
